<compile_context>
chip_gen: v6e
topology: v6e:2x2x1
jax: 0.10.0
libtpu: 0.0.40
codegen_flags: <defaults>
</compile_context>

<pallas_src>
import functools

import jax
import jax.numpy as jnp
from jax import lax
from jax.experimental import pallas as pl
from jax.experimental.pallas import tpu as pltpu

GROUPS = 32
EPS = 1e-5


# --------------------------------------------------------------------------------------
# Kernels
# --------------------------------------------------------------------------------------
def _up_conv_single_pass_kernel(x_ref, w_ref, b_ref, g_ref, bt_ref, gm_ref, gmt_ref,
                                o_ref, *, width, inv_n):
    """One sample per grid step; conv computed once, GroupNorm+ReLU fused in place.

    x_ref  : (1, (H+2)*W, 3*Cin) column-folded, row-padded input (whole sample)
    w_ref  : (3, 3*Cin, 4*Cout)  per-row-shift weights, col shifts folded into K,
                                 upsample phases folded into lanes
    b_ref  : (1, 4*Cout)         conv bias (tiled over the 4 phases)
    g_ref  : (1, 4*Cout)         GroupNorm gamma (tiled)
    bt_ref : (1, 4*Cout)         GroupNorm beta  (tiled)
    gm_ref : (4*Cout, GROUPS)    one-hot lane -> group membership
    gmt_ref: (GROUPS, 4*Cout)    its transpose
    o_ref  : (1, H*W, 4*Cout)    lane-dense output (4*Cout >= 128)
    """
    sp = o_ref.shape[1]                       # H*W rows of the pre-upsample image

    # Conv(3x3, pad=1) on the 2x nearest-upsampled input: 3 row-shifted dots, K=3*Cin.
    acc = jnp.dot(x_ref[0, pl.ds(0, sp), :], w_ref[0],
                  preferred_element_type=jnp.float32)
    for dyp in (1, 2):
        acc = acc + jnp.dot(x_ref[0, pl.ds(dyp * width, sp), :], w_ref[dyp],
                            preferred_element_type=jnp.float32)
    conv = acc + b_ref[...]                   # (H*W, 4*Cout) f32

    # Single-pass GroupNorm statistics over the whole sample.
    s1 = jnp.sum(conv, axis=0, keepdims=True)
    s2 = jnp.sum(conv * conv, axis=0, keepdims=True)
    mean = jnp.dot(jnp.dot(s1, gm_ref[...], preferred_element_type=jnp.float32),
                   gmt_ref[...], preferred_element_type=jnp.float32) * inv_n
    ex2 = jnp.dot(jnp.dot(s2, gm_ref[...], preferred_element_type=jnp.float32),
                  gmt_ref[...], preferred_element_type=jnp.float32) * inv_n
    var = ex2 - mean * mean
    scale = g_ref[...] * lax.rsqrt(var + EPS)
    shift = bt_ref[...] - mean * scale
    o_ref[0] = jnp.maximum(conv * scale + shift, 0.0).astype(o_ref.dtype)


def _up_conv_two_pass_kernel(x_ref, w_ref, b_ref, g_ref, bt_ref, gm_ref, gmt_ref,
                             o_ref, sum_ref, sq_ref, scale_ref, shift_ref,
                             *, width, inv_n):
    """Streaming fallback for large images: grid = (sample, pass, row-tile).

    pass 0: accumulate per-lane sum / sum-of-squares into VMEM scratch.
    pass 1: at t==0 compute per-sample scale/shift once (hoisted), then each tile
            recomputes its conv and applies fused FMA + ReLU + store.
    """
    p = pl.program_id(1)          # 0 = stats sweep, 1 = normalize + write sweep
    t = pl.program_id(2)          # row-tile index
    s_tile = o_ref.shape[1]

    base = pl.multiple_of(t * s_tile, s_tile)
    acc = jnp.dot(x_ref[0, pl.ds(base, s_tile), :], w_ref[0],
                  preferred_element_type=jnp.float32)
    for dyp in (1, 2):
        acc = acc + jnp.dot(x_ref[0, pl.ds(base + dyp * width, s_tile), :], w_ref[dyp],
                            preferred_element_type=jnp.float32)
    conv = acc + b_ref[...]                   # (S_tile, 4*Cout) f32

    @pl.when(jnp.logical_and(p == 0, t == 0))
    def _init_stats():
        sum_ref[...] = jnp.zeros_like(sum_ref)
        sq_ref[...] = jnp.zeros_like(sq_ref)

    @pl.when(p == 0)
    def _accumulate_stats():
        sum_ref[...] += jnp.sum(conv, axis=0, keepdims=True)
        sq_ref[...] += jnp.sum(conv * conv, axis=0, keepdims=True)

    @pl.when(jnp.logical_and(p == 1, t == 0))
    def _finalize_stats():                    # once per sample, hoisted out of epilogue
        mean = jnp.dot(jnp.dot(sum_ref[...], gm_ref[...],
                               preferred_element_type=jnp.float32),
                       gmt_ref[...], preferred_element_type=jnp.float32) * inv_n
        ex2 = jnp.dot(jnp.dot(sq_ref[...], gm_ref[...],
                              preferred_element_type=jnp.float32),
                      gmt_ref[...], preferred_element_type=jnp.float32) * inv_n
        var = ex2 - mean * mean
        scale = g_ref[...] * lax.rsqrt(var + EPS)
        scale_ref[...] = scale
        shift_ref[...] = bt_ref[...] - mean * scale

    @pl.when(p == 1)
    def _normalize_and_write():
        o_ref[0] = jnp.maximum(conv * scale_ref[...] + shift_ref[...],
                               0.0).astype(o_ref.dtype)


# --------------------------------------------------------------------------------------
# Wrapper
# --------------------------------------------------------------------------------------
def _tpu_vmem_bytes():
    try:
        return int(pltpu.get_tpu_info().vmem_capacity_bytes)
    except Exception:
        return 64 * 1024 * 1024        # conservative (v7x-sized) fallback


def _pick_row_tile(h, w, c4, tile_cap_bytes, hard_cap_bytes):
    """Largest divisor of H whose (rows*W, 4*Cout) f32 tile fits tile_cap; fail loudly
    if even the smallest sublane-aligned tile blows past hard_cap."""
    aligned = [d for d in range(1, h + 1)
               if h % d == 0 and (d == h or (d * w) % 8 == 0)]
    fitting = [d for d in aligned if d * w * c4 * 4 <= tile_cap_bytes]
    if fitting:
        return max(fitting)
    d = min(aligned)
    if d * w * c4 * 4 > hard_cap_bytes:
        raise ValueError(
            f"up_conv: smallest sublane-aligned row tile ({d} rows = "
            f"{d * w * c4 * 4} bytes) exceeds the VMEM budget "
            f"({hard_cap_bytes} bytes); pad W or reduce channels.")
    return d


def up_conv_forward(x, w, b, gamma, beta, *, matmul_dtype=jnp.bfloat16,
                    out_dtype=jnp.bfloat16, force_two_pass=False, row_tile=None):
    n, cin, h, wd = x.shape
    cout = w.shape[0]
    assert cout % GROUPS == 0, "GroupNorm(32) needs out_ch % 32 == 0"
    cg = cout // GROUPS
    c4 = 4 * cout                      # 4 upsample phases folded into the lane dim
    k3 = 3 * cin                       # column shifts folded into the matmul K dim

    # --- generation-aware sizing --------------------------------------------------
    vmem_cap = _tpu_vmem_bytes()
    if vmem_cap >= 100 * 1024 * 1024:          # v5e / v6e (128 MiB VMEM)
        vmem_limit = 64 * 1024 * 1024
        tile_cap = 2 * 1024 * 1024
        single_budget = 24 * 1024 * 1024
    else:                                      # v7x (64 MiB VMEM per TC)
        vmem_limit = 40 * 1024 * 1024
        tile_cap = 1 * 1024 * 1024
        single_budget = 12 * 1024 * 1024

    # --- weights: fold 3x3 taps per (row-shift, col-shift-in-K, phase-in-lane) -----
    # dyp = (py+ky+1)//2, dxp = (px+kx+1)//2 maps each original tap of the conv on the
    # upsampled image onto one of 9 shifts of the original-resolution (padded) input.
    w_f = w.astype(jnp.float32)
    w_fold = jnp.zeros((3, k3, c4), jnp.float32)
    for py in range(2):
        for px in range(2):
            lane0 = (py * 2 + px) * cout
            for ky in range(3):
                for kx in range(3):
                    dyp = (py + ky + 1) // 2
                    dxp = (px + kx + 1) // 2
                    w_fold = w_fold.at[dyp, dxp * cin:(dxp + 1) * cin,
                                       lane0:lane0 + cout].add(w_f[:, :, ky, kx].T)
    w_fold_m = w_fold.astype(matmul_dtype)

    # --- activations: channels-last, zero-pad, column shifts folded into channels --
    # (3x the ORIGINAL-resolution input -- far smaller than upsample + im2col.)
    x_nhwc = jnp.transpose(x, (0, 2, 3, 1))
    x_pad = jnp.pad(x_nhwc, ((0, 0), (1, 1), (1, 1), (0, 0)))       # (N, H+2, W+2, Cin)
    xcb = jnp.concatenate([x_pad[:, :, dx:dx + wd, :] for dx in range(3)], axis=-1)
    xcb = xcb.reshape(n, (h + 2) * wd, k3).astype(matmul_dtype)     # (N, (H+2)*W, 3*Cin)

    # --- per-lane GroupNorm parameters (tiled over the 4 phases) -------------------
    b4 = jnp.tile(b.astype(jnp.float32), 4)[None, :]
    g4 = jnp.tile(gamma.astype(jnp.float32), 4)[None, :]
    bt4 = jnp.tile(beta.astype(jnp.float32), 4)[None, :]
    lane_ch = jnp.arange(c4) % cout
    gmat = (lane_ch[:, None] // cg == jnp.arange(GROUPS)[None, :]).astype(jnp.float32)
    gmat_t = gmat.T
    inv_n = 1.0 / float(cg * 4 * h * wd)       # elements per (sample, group)

    sp_rows = (h + 2) * wd
    mm_item = jnp.dtype(matmul_dtype).itemsize
    out_item = jnp.dtype(out_dtype).itemsize
    x_block_bytes = sp_rows * k3 * mm_item
    out_block_bytes = h * wd * c4 * out_item
    conv_bytes = h * wd * c4 * 4
    w_bytes = 3 * k3 * c4 * mm_item

    single_pass_vmem = (conv_bytes + 2 * x_block_bytes + 2 * out_block_bytes
                        + 2 * w_bytes + (1 << 20))
    use_single = (not force_two_pass) and single_pass_vmem <= single_budget
    num_passes = 1 if use_single else 2

    cost = pl.CostEstimate(
        flops=2 * 9 * cin * h * wd * c4 * n * num_passes,
        transcendentals=n * c4,
        bytes_accessed=n * (x_block_bytes + out_block_bytes) + w_bytes)

    if use_single:
        kernel = functools.partial(_up_conv_single_pass_kernel, width=wd, inv_n=inv_n)
        out = pl.pallas_call(
            kernel,
            out_shape=jax.ShapeDtypeStruct((n, h * wd, c4), out_dtype),
            grid=(n,),
            in_specs=[
                pl.BlockSpec((1, sp_rows, k3), lambda i: (i, 0, 0)),      # x (per sample)
                pl.BlockSpec((3, k3, c4), lambda i: (0, 0, 0)),           # weights
                pl.BlockSpec((1, c4), lambda i: (0, 0)),                  # bias
                pl.BlockSpec((1, c4), lambda i: (0, 0)),                  # gamma
                pl.BlockSpec((1, c4), lambda i: (0, 0)),                  # beta
                pl.BlockSpec((c4, GROUPS), lambda i: (0, 0)),             # group one-hot
                pl.BlockSpec((GROUPS, c4), lambda i: (0, 0)),             # its transpose
            ],
            out_specs=pl.BlockSpec((1, h * wd, c4), lambda i: (i, 0, 0)),
            compiler_params=pltpu.CompilerParams(
                dimension_semantics=("parallel",),
                vmem_limit_bytes=vmem_limit),
            cost_estimate=cost,
        )(xcb, w_fold_m, b4, g4, bt4, gmat, gmat_t)
    else:
        if row_tile is not None:
            th = int(row_tile)
            assert h % th == 0 and (th == h or (th * wd) % 8 == 0), "bad row_tile"
        else:
            th = _pick_row_tile(h, wd, c4, tile_cap, vmem_limit // 4)
        n_tiles = h // th
        s_tile = th * wd

        kernel = functools.partial(_up_conv_two_pass_kernel, width=wd, inv_n=inv_n)
        out = pl.pallas_call(
            kernel,
            out_shape=jax.ShapeDtypeStruct((n, h * wd, c4), out_dtype),
            grid=(n, 2, n_tiles),
            in_specs=[
                pl.BlockSpec((1, sp_rows, k3), lambda i, p, t: (i, 0, 0)),
                pl.BlockSpec((3, k3, c4), lambda i, p, t: (0, 0, 0)),
                pl.BlockSpec((1, c4), lambda i, p, t: (0, 0)),
                pl.BlockSpec((1, c4), lambda i, p, t: (0, 0)),
                pl.BlockSpec((1, c4), lambda i, p, t: (0, 0)),
                pl.BlockSpec((c4, GROUPS), lambda i, p, t: (0, 0)),
                pl.BlockSpec((GROUPS, c4), lambda i, p, t: (0, 0)),
            ],
            # Pass 0 parks on block (i, 0) and never writes it; pass 1 (t=0) fully
            # overwrites that same buffer before the first block-index change, so no
            # garbage is ever written back.  This relies on row-major (i, p, t) grid
            # order with t fastest -- do not reorder the grid axes.
            out_specs=pl.BlockSpec((1, s_tile, c4), lambda i, p, t: (i, t * p, 0)),
            scratch_shapes=[pltpu.VMEM((1, c4), jnp.float32),    # running sum
                            pltpu.VMEM((1, c4), jnp.float32),    # running sum of squares
                            pltpu.VMEM((1, c4), jnp.float32),    # hoisted scale
                            pltpu.VMEM((1, c4), jnp.float32)],   # hoisted shift
            compiler_params=pltpu.CompilerParams(
                dimension_semantics=("parallel", "arbitrary", "arbitrary"),
                vmem_limit_bytes=vmem_limit),
            cost_estimate=cost,
        )(xcb, w_fold_m, b4, g4, bt4, gmat, gmat_t)

    # (N, H*W, [py, px, co]) -> NCHW (N, Cout, 2H, 2W).  Done in out_dtype (bf16 by
    # default) so the only remaining full-output XLA rearrangement moves half the bytes.
    out = out.reshape(n, h, wd, 2, 2, cout)
    out = out.transpose(0, 5, 1, 3, 2, 4)
    return out.reshape(n, cout, 2 * h, 2 * wd)


# --------------------------------------------------------------------------------------
# Pure-JAX reference (matches the PyTorch module)
# --------------------------------------------------------------------------------------
def up_conv_reference(x, w, b, gamma, beta):
    x_up = jnp.repeat(jnp.repeat(x, 2, axis=2), 2, axis=3)
    conv = lax.conv_general_dilated(
        x_up, w, window_strides=(1, 1), padding=[(1, 1), (1, 1)],
        dimension_numbers=("NCHW", "OIHW", "NCHW"),
        precision=lax.Precision.HIGHEST,
    ) + b[None, :, None, None]
    n, c, hh, ww = conv.shape
    grp = conv.reshape(n, GROUPS, c // GROUPS, hh, ww)
    mean = grp.mean(axis=(2, 3, 4), keepdims=True)
    var = ((grp - mean) ** 2).mean(axis=(2, 3, 4), keepdims=True)
    normed = ((grp - mean) / jnp.sqrt(var + EPS)).reshape(n, c, hh, ww)
    y = normed * gamma[None, :, None, None] + beta[None, :, None, None]
    return jnp.maximum(y, 0.0)


if __name__ == "__main__":
    # Small shapes consistent with the module (GroupNorm(32) requires out_ch % 32 == 0).
    N, C_IN, C_OUT, H_IN, W_IN = 2, 4, 32, 16, 16

    key = jax.random.PRNGKey(0)
    kx, kw, kb, kg, kbt = jax.random.split(key, 5)
    x = jax.random.normal(kx, (N, C_IN, H_IN, W_IN), jnp.float32)
    fan_in = C_IN * 9
    w = jax.random.normal(kw, (C_OUT, C_IN, 3, 3), jnp.float32) * (1.0 / fan_in) ** 0.5
    b = jax.random.normal(kb, (C_OUT,), jnp.float32) * 0.1
    gamma = 1.0 + 0.1 * jax.random.normal(kg, (C_OUT,), jnp.float32)
    beta = 0.1 * jax.random.normal(kbt, (C_OUT,), jnp.float32)

    ref = jax.block_until_ready(up_conv_reference(x, w, b, gamma, beta))

    # 1) f32 operands + f32 stores, single-pass fast path.  Tolerance covers TPU
    #    default matmul precision and the pre-combined weight-tap rounding.
    out_f32 = jax.block_until_ready(
        up_conv_forward(x, w, b, gamma, beta,
                        matmul_dtype=jnp.float32, out_dtype=jnp.float32))
    assert out_f32.shape == (N, C_OUT, 2 * H_IN, 2 * W_IN)
    err_f32 = float(jnp.max(jnp.abs(out_f32 - ref)))
    assert jnp.allclose(out_f32, ref, atol=2e-2, rtol=2e-2), err_f32

    # 2) Forced streaming two-pass path (multiple row tiles) in f32 to exercise the
    #    VMEM-limited fallback (scratch stats + hoisted scale/shift + parked block).
    out_2p = jax.block_until_ready(
        up_conv_forward(x, w, b, gamma, beta,
                        matmul_dtype=jnp.float32, out_dtype=jnp.float32,
                        force_two_pass=True, row_tile=4))
    err_2p = float(jnp.max(jnp.abs(out_2p - ref)))
    assert jnp.allclose(out_2p, ref, atol=2e-2, rtol=2e-2), err_2p

    # 3) Default bandwidth-optimized path: bf16 matmul operands + bf16 stores,
    #    f32 accumulation and GroupNorm math.
    out_bf16 = jax.block_until_ready(up_conv_forward(x, w, b, gamma, beta))
    assert out_bf16.shape == (N, C_OUT, 2 * H_IN, 2 * W_IN)
    out_bf16_f32 = out_bf16.astype(jnp.float32)
    err_bf16 = float(jnp.max(jnp.abs(out_bf16_f32 - ref)))
    assert jnp.allclose(out_bf16_f32, ref, atol=6e-2, rtol=6e-2), err_bf16

    print("KERNEL_OK")
</pallas_src>

<mosaic_0001>
module attributes {stable_mosaic.version = 11 : i64} {
  func.func @_up_conv_single_pass_kernel(%arg0: i32, %arg1: memref<1x288x12xf32, #tpu.memory_space<vmem>>, %arg2: memref<3x12x128xf32, #tpu.memory_space<vmem>>, %arg3: memref<1x128xf32, #tpu.memory_space<vmem>>, %arg4: memref<1x128xf32, #tpu.memory_space<vmem>>, %arg5: memref<1x128xf32, #tpu.memory_space<vmem>>, %arg6: memref<128x32xf32, #tpu.memory_space<vmem>>, %arg7: memref<32x128xf32, #tpu.memory_space<vmem>>, %arg8: memref<1x256x128xf32, #tpu.memory_space<vmem>>) attributes {dimension_semantics = [#tpu.dimension_semantics<parallel>], iteration_bounds = array<i64: 2>, scalar_prefetch = 0 : i64, scratch_operands = 0 : i64, tpu.core_type = #tpu.core_type<tc>, window_params = [{transform_indices = @transform_0, window_bounds = array<i64: 1, 288, 12>}, {pipeline_mode = #tpu.pipeline_mode<synchronous>, transform_indices = @transform_1, window_bounds = array<i64: 3, 12, 128>}, {pipeline_mode = #tpu.pipeline_mode<synchronous>, transform_indices = @transform_2, window_bounds = array<i64: 1, 128>}, {pipeline_mode = #tpu.pipeline_mode<synchronous>, transform_indices = @transform_3, window_bounds = array<i64: 1, 128>}, {pipeline_mode = #tpu.pipeline_mode<synchronous>, transform_indices = @transform_4, window_bounds = array<i64: 1, 128>}, {pipeline_mode = #tpu.pipeline_mode<synchronous>, transform_indices = @transform_5, window_bounds = array<i64: 128, 32>}, {pipeline_mode = #tpu.pipeline_mode<synchronous>, transform_indices = @transform_6, window_bounds = array<i64: 32, 128>}, {transform_indices = @transform_7, window_bounds = array<i64: 1, 256, 128>}]} {
    %c0 = arith.constant 0 : index
    %c0_0 = arith.constant 0 : index
    %c0_1 = arith.constant 0 : index
    %0 = vector.load %arg1[%c0, %c0_0, %c0_1] : memref<1x288x12xf32, #tpu.memory_space<vmem>>, vector<1x256x12xf32>
    %1 = vector.shape_cast %0 : vector<1x256x12xf32> to vector<256x12xf32>
    %c0_2 = arith.constant 0 : index
    %c0_3 = arith.constant 0 : index
    %c0_4 = arith.constant 0 : index
    %2 = vector.load %arg2[%c0_2, %c0_3, %c0_4] : memref<3x12x128xf32, #tpu.memory_space<vmem>>, vector<1x12x128xf32>
    %3 = vector.shape_cast %2 : vector<1x12x128xf32> to vector<12x128xf32>
    %cst = arith.constant dense<0.000000e+00> : vector<256x128xf32>
    %4 = tpu.matmul %1, %3, %cst {dimension_numbers = #tpu.dot_dimension_numbers<[1], [0], [0], [1], [0, 0, 1, 1], [], []>} : vector<256x12xf32>, vector<12x128xf32>, vector<256x128xf32> -> vector<256x128xf32>
    %c0_5 = arith.constant 0 : index
    %c16 = arith.constant 16 : index
    %c0_6 = arith.constant 0 : index
    %5 = vector.load %arg1[%c0_5, %c16, %c0_6] : memref<1x288x12xf32, #tpu.memory_space<vmem>>, vector<1x256x12xf32>
    %6 = vector.shape_cast %5 : vector<1x256x12xf32> to vector<256x12xf32>
    %c1 = arith.constant 1 : index
    %c0_7 = arith.constant 0 : index
    %c0_8 = arith.constant 0 : index
    %7 = vector.load %arg2[%c1, %c0_7, %c0_8] : memref<3x12x128xf32, #tpu.memory_space<vmem>>, vector<1x12x128xf32>
    %8 = vector.shape_cast %7 : vector<1x12x128xf32> to vector<12x128xf32>
    %cst_9 = arith.constant dense<0.000000e+00> : vector<256x128xf32>
    %9 = tpu.matmul %6, %8, %cst_9 {dimension_numbers = #tpu.dot_dimension_numbers<[1], [0], [0], [1], [0, 0, 1, 1], [], []>} : vector<256x12xf32>, vector<12x128xf32>, vector<256x128xf32> -> vector<256x128xf32>
    %10 = arith.addf %4, %9 : vector<256x128xf32>
    %c0_10 = arith.constant 0 : index
    %c32 = arith.constant 32 : index
    %c0_11 = arith.constant 0 : index
    %11 = vector.load %arg1[%c0_10, %c32, %c0_11] : memref<1x288x12xf32, #tpu.memory_space<vmem>>, vector<1x256x12xf32>
    %12 = vector.shape_cast %11 : vector<1x256x12xf32> to vector<256x12xf32>
    %c2 = arith.constant 2 : index
    %c0_12 = arith.constant 0 : index
    %c0_13 = arith.constant 0 : index
    %13 = vector.load %arg2[%c2, %c0_12, %c0_13] : memref<3x12x128xf32, #tpu.memory_space<vmem>>, vector<1x12x128xf32>
    %14 = vector.shape_cast %13 : vector<1x12x128xf32> to vector<12x128xf32>
    %cst_14 = arith.constant dense<0.000000e+00> : vector<256x128xf32>
    %15 = tpu.matmul %12, %14, %cst_14 {dimension_numbers = #tpu.dot_dimension_numbers<[1], [0], [0], [1], [0, 0, 1, 1], [], []>} : vector<256x12xf32>, vector<12x128xf32>, vector<256x128xf32> -> vector<256x128xf32>
    %16 = arith.addf %10, %15 : vector<256x128xf32>
    %c0_15 = arith.constant 0 : index
    %c0_16 = arith.constant 0 : index
    %17 = vector.load %arg3[%c0_15, %c0_16] : memref<1x128xf32, #tpu.memory_space<vmem>>, vector<1x128xf32>
    %18 = vector.broadcast %17 : vector<1x128xf32> to vector<256x128xf32>
    %19 = arith.addf %16, %18 : vector<256x128xf32>
    %cst_17 = arith.constant dense<0.000000e+00> : vector<128xf32>
    %20 = vector.multi_reduction <add>, %19, %cst_17 [0] : vector<256x128xf32> to vector<128xf32>
    %21 = vector.shape_cast %20 : vector<128xf32> to vector<1x128xf32>
    %22 = arith.mulf %19, %19 : vector<256x128xf32>
    %cst_18 = arith.constant dense<0.000000e+00> : vector<128xf32>
    %23 = vector.multi_reduction <add>, %22, %cst_18 [0] : vector<256x128xf32> to vector<128xf32>
    %24 = vector.shape_cast %23 : vector<128xf32> to vector<1x128xf32>
    %c0_19 = arith.constant 0 : index
    %c0_20 = arith.constant 0 : index
    %25 = vector.load %arg6[%c0_19, %c0_20] : memref<128x32xf32, #tpu.memory_space<vmem>>, vector<128x32xf32>
    %cst_21 = arith.constant dense<0.000000e+00> : vector<1x32xf32>
    %26 = tpu.matmul %21, %25, %cst_21 {dimension_numbers = #tpu.dot_dimension_numbers<[1], [0], [0], [1], [0, 0, 1, 1], [], []>} : vector<1x128xf32>, vector<128x32xf32>, vector<1x32xf32> -> vector<1x32xf32>
    %c0_22 = arith.constant 0 : index
    %c0_23 = arith.constant 0 : index
    %27 = vector.load %arg7[%c0_22, %c0_23] : memref<32x128xf32, #tpu.memory_space<vmem>>, vector<32x128xf32>
    %cst_24 = arith.constant dense<0.000000e+00> : vector<1x128xf32>
    %28 = tpu.matmul %26, %27, %cst_24 {dimension_numbers = #tpu.dot_dimension_numbers<[1], [0], [0], [1], [0, 0, 1, 1], [], []>} : vector<1x32xf32>, vector<32x128xf32>, vector<1x128xf32> -> vector<1x128xf32>
    %cst_25 = arith.constant 9.765625E-4 : f32
    %29 = vector.broadcast %cst_25 : f32 to vector<1x128xf32>
    %30 = arith.mulf %28, %29 : vector<1x128xf32>
    %c0_26 = arith.constant 0 : index
    %c0_27 = arith.constant 0 : index
    %31 = vector.load %arg6[%c0_26, %c0_27] : memref<128x32xf32, #tpu.memory_space<vmem>>, vector<128x32xf32>
    %cst_28 = arith.constant dense<0.000000e+00> : vector<1x32xf32>
    %32 = tpu.matmul %24, %31, %cst_28 {dimension_numbers = #tpu.dot_dimension_numbers<[1], [0], [0], [1], [0, 0, 1, 1], [], []>} : vector<1x128xf32>, vector<128x32xf32>, vector<1x32xf32> -> vector<1x32xf32>
    %c0_29 = arith.constant 0 : index
    %c0_30 = arith.constant 0 : index
    %33 = vector.load %arg7[%c0_29, %c0_30] : memref<32x128xf32, #tpu.memory_space<vmem>>, vector<32x128xf32>
    %cst_31 = arith.constant dense<0.000000e+00> : vector<1x128xf32>
    %34 = tpu.matmul %32, %33, %cst_31 {dimension_numbers = #tpu.dot_dimension_numbers<[1], [0], [0], [1], [0, 0, 1, 1], [], []>} : vector<1x32xf32>, vector<32x128xf32>, vector<1x128xf32> -> vector<1x128xf32>
    %cst_32 = arith.constant 9.765625E-4 : f32
    %35 = vector.broadcast %cst_32 : f32 to vector<1x128xf32>
    %36 = arith.mulf %34, %35 : vector<1x128xf32>
    %37 = arith.mulf %30, %30 : vector<1x128xf32>
    %38 = arith.subf %36, %37 : vector<1x128xf32>
    %c0_33 = arith.constant 0 : index
    %c0_34 = arith.constant 0 : index
    %39 = vector.load %arg4[%c0_33, %c0_34] : memref<1x128xf32, #tpu.memory_space<vmem>>, vector<1x128xf32>
    %cst_35 = arith.constant 9.99999974E-6 : f32
    %40 = vector.broadcast %cst_35 : f32 to vector<1x128xf32>
    %41 = arith.addf %38, %40 : vector<1x128xf32>
    %42 = math.rsqrt %41 : vector<1x128xf32>
    %43 = arith.mulf %39, %42 : vector<1x128xf32>
    %c0_36 = arith.constant 0 : index
    %c0_37 = arith.constant 0 : index
    %44 = vector.load %arg5[%c0_36, %c0_37] : memref<1x128xf32, #tpu.memory_space<vmem>>, vector<1x128xf32>
    %45 = arith.mulf %30, %43 : vector<1x128xf32>
    %46 = arith.subf %44, %45 : vector<1x128xf32>
    %47 = vector.broadcast %43 : vector<1x128xf32> to vector<256x128xf32>
    %48 = arith.mulf %19, %47 : vector<256x128xf32>
    %49 = vector.broadcast %46 : vector<1x128xf32> to vector<256x128xf32>
    %50 = arith.addf %48, %49 : vector<256x128xf32>
    %cst_38 = arith.constant 0.000000e+00 : f32
    %51 = vector.broadcast %cst_38 : f32 to vector<256x128xf32>
    %52 = arith.maximumf %50, %51 : vector<256x128xf32>
    %c0_39 = arith.constant 0 : index
    %c0_40 = arith.constant 0 : index
    %c0_41 = arith.constant 0 : index
    %53 = vector.load %arg8[%c0_39, %c0_40, %c0_41] : memref<1x256x128xf32, #tpu.memory_space<vmem>>, vector<1x256x128xf32>
    %54 = vector.shape_cast %53 : vector<1x256x128xf32> to vector<256x128xf32>
    %55 = vector.shape_cast %52 : vector<256x128xf32> to vector<1x256x128xf32>
    tpu.vector_store %arg8[%c0_39, %c0_40, %c0_41], %55 {strides = array<i32>} : memref<1x256x128xf32, #tpu.memory_space<vmem>>, vector<1x256x128xf32>,
    return
  }
  func.func @transform_0(%arg0: i32) -> (i32, i32, i32) {
    %c0_i32 = arith.constant 0 : i32
    %c0_i32_0 = arith.constant 0 : i32
    %c0_i32_1 = arith.constant 0 : i32
    return %arg0, %c0_i32, %c0_i32_0 : i32, i32, i32
  }
  func.func @transform_1(%arg0: i32) -> (i32, i32, i32) {
    %c0_i32 = arith.constant 0 : i32
    %c0_i32_0 = arith.constant 0 : i32
    %c0_i32_1 = arith.constant 0 : i32
    %c0_i32_2 = arith.constant 0 : i32
    return %c0_i32, %c0_i32_0, %c0_i32_1 : i32, i32, i32
  }
  func.func @transform_2(%arg0: i32) -> (i32, i32) {
    %c0_i32 = arith.constant 0 : i32
    %c0_i32_0 = arith.constant 0 : i32
    %c0_i32_1 = arith.constant 0 : i32
    return %c0_i32, %c0_i32_0 : i32, i32
  }
  func.func @transform_3(%arg0: i32) -> (i32, i32) {
    %c0_i32 = arith.constant 0 : i32
    %c0_i32_0 = arith.constant 0 : i32
    %c0_i32_1 = arith.constant 0 : i32
    return %c0_i32, %c0_i32_0 : i32, i32
  }
  func.func @transform_4(%arg0: i32) -> (i32, i32) {
    %c0_i32 = arith.constant 0 : i32
    %c0_i32_0 = arith.constant 0 : i32
    %c0_i32_1 = arith.constant 0 : i32
    return %c0_i32, %c0_i32_0 : i32, i32
  }
  func.func @transform_5(%arg0: i32) -> (i32, i32) {
    %c0_i32 = arith.constant 0 : i32
    %c0_i32_0 = arith.constant 0 : i32
    %c0_i32_1 = arith.constant 0 : i32
    return %c0_i32, %c0_i32_0 : i32, i32
  }
  func.func @transform_6(%arg0: i32) -> (i32, i32) {
    %c0_i32 = arith.constant 0 : i32
    %c0_i32_0 = arith.constant 0 : i32
    %c0_i32_1 = arith.constant 0 : i32
    return %c0_i32, %c0_i32_0 : i32, i32
  }
  func.func @transform_7(%arg0: i32) -> (i32, i32, i32) {
    %c0_i32 = arith.constant 0 : i32
    %c0_i32_0 = arith.constant 0 : i32
    %c0_i32_1 = arith.constant 0 : i32
    return %arg0, %c0_i32, %c0_i32_0 : i32, i32, i32
  }
}

</mosaic_0001>

<bundles_post_ra>
// kernel: tpu_custom_call.1
= control target key start
LH: loop header
LB: loop body
LE: loop exit
PB: predicated region body
PF: predicated region fallthrough
CT: control target
= control target key end

     0   :  { %12 = vsyncpa [#allocation3], 0  ;;  %s3606_s0 = inlined_call_operand.vmem [shape: f32[2,288,12], index: 0, kind: input, shape index: {}]   ;;  %s3607_s1 = inlined_call_operand.vmem [shape: f32[3,12,128], index: 1, kind: input, shape index: {}]   ;;  %s3608_s2 = inlined_call_operand.vmem [shape: f32[1,128], index: 2, kind: input, shape index: {}]   ;;  %s3609_s3 = inlined_call_operand.vmem [shape: f32[1,128], index: 3, kind: input, shape index: {}]   ;;  %s3610_s4 = inlined_call_operand.vmem [shape: f32[1,128], index: 4, kind: input, shape index: {}]   ;;  %s3611_s5 = inlined_call_operand.vmem [shape: f32[128,32], index: 5, kind: input, shape index: {}]   ;;  %s3612_s6 = inlined_call_operand.vmem [shape: f32[32,128], index: 6, kind: input, shape index: {}]   ;;  %s3613_s7 = inlined_call_operand.hbm [shape: f32[2,256,128], index: 7, kind: output, shape index: {}]  }
   0x1   :  { %14 = vsyncpa [#allocation3 + $0x1], 0  ;;  %s2615_s24 = smov 0   ;;  %s2617_s25 = smov 0  }
   0x2   :  { %s2619_s26 = smov 0   ;;  %s2621_s27 = smov 0  }
   0x3 LB: > { %s2636_s28 = sadd.s32 4294967295, %s2568_s27   ;;  %s1946_s29 = sadd.s32 4294967294, %s2568_s27   ;;  %s2568_s27 = sphi %s2621_s27, %s3664_s27   ;;  %s2564_s26 = sphi %s2619_s26, %s3663_s26   ;;  %s2560_s25 = sphi %s2617_s25, %s3662_s25   ;;  %s2556_s24 = sphi %s2615_s24, %s3661_s24  }
   0x4   : > { %s2640_s30 = sadd.s32 1, %s2568_s27   ;;  %s179_s8 = sadd.s32 1, %s2564_s26 }
   0x5   : > { %s176_s9 = ssub.s32 %s2568_s27, %s2640_s30  ;;  %p189_p0 = scmp.ne.s32.totalorder %s2564_s26, %s2560_s25 }
   0x6   : > { %p177_p1 = scmp.eq.s32.totalorder %s176_s9, 0  ;;  %p190_p2 = scmp.eq.s32.totalorder %s2636_s28, 1 }
   0x7   : > { %p195_p3 = scmp.ne.s32.totalorder %s2560_s25, %s2556_s24  ;;  %p196_p4 = scmp.eq.s32.totalorder %s1946_s29, 1 }
   0x8   : > { %s2651_s10 = scalar_select %p177_p1, %s2564_s26, %s179_s8  }
   0x9   : > { %p2653_p5 = por %p190_p2, %p189_p0  ;;  %p2657_p6 = por %p196_p4, %p195_p3 }
   0xa   : > { %p1949_p7 = scmp.ge.s32.totalorder %s2568_s27, 1  ;;  %p240_p8 = scmp.lt.s32.totalorder %s2568_s27, 3 }
   0xc   : > { %p241_p9 = pnand %p1949_p7, %p240_p8 }
   0xe   : > { %244 = sbr.rel (%p241_p9) target bundleno = 1045 (0x415), region = 48 }
  0x13   : > { %v1953_v0 = vld [vmem:[%s3607_s1 + $0x18] sm:$0xf]  ;;  %vm413_vm0 = vcmask 1043456   ;;  %v1952_v1 = vld [vmem:[%s3607_s1 + $0x10] sm:$0xff]  ;;  %p272_p10 = scmp.lt.s32.totalorder %s2636_s28, 1  ;;  %vm316_vm1 = vcmask 97280  }
  0x14   : > { %2210 = vmatprep.subr.msk.mxu0 %vm413_vm0, %v1953_v0  ;;  %2458 = vmatprep.subr.msk.mxu1 %vm413_vm0, %v1953_v0  ;;  %v2021_v2 = vld [vmem:[%s3607_s1 + $0x28] sm:$0xf]  ;;  %v309_v8 = vld [vmem:[%s3607_s1] sm:$0xff]  ;;  %v2904_v42 = vld [vmem:[%s3611_s5 + $0x78] sm:$0xff]  ;;  %v3614_v43 = vmov 0.0   ;;  %vm2571_vm2 = vmmov 0  }
  0x15   : > { %2211 = vmatpush3.msk.msra.mxu0 %vm413_vm0, %v1953_v0  ;;  %2460 = vmatpush3.msk.msra.mxu1 %vm413_vm0, %v1953_v0  ;;  %s273_s17 = scalar_select %p272_p10, %s2636_s28, 1  ;;  %v310_v3 = vld [vmem:[%s3607_s1 + $0x8] sm:$0xf]  ;;  %v2020_v14 = vld [vmem:[%s3607_s1 + $0x20] sm:$0xff]  ;;  %v2912_v44 = vld [vmem:[%s3611_s5 + $0x70] sm:$0xff]  ;;  %vm1502_vm3 = vcmask 261120  }
  0x16   : > { %2212 = vmatprep.subr.mxu0 %v1952_v1  ;;  %2459 = vmatprep.subr.mxu1 %v1952_v1  ;;  %v2919_v45 = vld [vmem:[%s3611_s5 + $0x68] sm:$0xff]  ;;  %v2926_v46 = vld [vmem:[%s3611_s5 + $0x60] sm:$0xff]  ;;  %v2933_v47 = vld [vmem:[%s3611_s5 + $0x58] sm:$0xff]  ;;  %s269_s20 = sand.u32 1, %s2560_s25   ;;  %s2063_s23 = sshll.u32 %s2636_s28, 12 }
  0x17   : > { %2213 = vmatpush3.msra.mxu0 %v1952_v1  ;;  %2461 = vmatpush3.msra.mxu1 %v1952_v1  ;;  %s2462_s22 = smul.u32 288, %s273_s17  ;;  %3632 = vst [vmem:[#allocation5_spill] sm:$0xff] %v2919_v45  ;;  %3633 = vst [vmem:[#allocation6_spill] sm:$0xff] %v2926_v46  ;;  %v2940_v48 = vld [vmem:[%s3611_s5 + $0x50] sm:$0xff]  ;;  %v2947_v49 = vld [vmem:[%s3611_s5 + $0x48] sm:$0xff]  ;;  %s1950_s21 = sshll.u32 %s269_s20, 8 }
  0x18   : > { %2314 = vmatprep.subr.msk.mxu0 %vm413_vm0, %v2021_v2  ;;  %2262 = vmatprep.subr.msk.mxu1 %vm413_vm0, %v310_v3  ;;  %3634 = vst [vmem:[#allocation7_spill] sm:$0xff] %v2933_v47  ;;  %3635 = vst [vmem:[#allocation8_spill] sm:$0xff] %v2940_v48  ;;  %v2954_v50 = vld [vmem:[%s3611_s5 + $0x40] sm:$0xff]  ;;  %v2961_v51 = vld [vmem:[%s3611_s5 + $0x38] sm:$0xff]  ;;  %s3548_s9 = scalar_lea.hbm %s3613_s7, %s2063_s23  ;;  %s3566_s13 = scalar_lea.sflag [#allocation3], %s269_s20 }
  0x19   : > { %s2686_s8 = scalar_lea.vmem %s3606_s0, %s2462_s22  ;;  %3636 = vst [vmem:[#allocation9_spill] sm:$0xff] %v2947_v49  ;;  %3637 = vst [vmem:[#allocation10_spill] sm:$0xff] %v2954_v50  ;;  %v2968_v52 = vld [vmem:[%s3611_s5 + $0x30] sm:$0xff]  ;;  %v2975_v53 = vld [vmem:[%s3611_s5 + $0x28] sm:$0xff]  ;;  %s3507_s22 = scalar_lea.vmem [#allocation2], %s1950_s21 }
  0x1a   : > { %v279_v4 = vld [vmem:[%s2686_s8 + $0x10] sm:$0xff]  ;;  %v2690_v5 = vld [vmem:[%s2686_s8 + $0x100] sm:$0xff]  ;;  %v280_v6 = vld [vmem:[%s2686_s8 + $0x18] sm:$0xff]  ;;  %3638 = vst [vmem:[#allocation11_spill] sm:$0xff] %v2961_v51  ;;  %s1884_s29 = sshll.u32 %s3507_s22, 4  ;;  %s2572_s15 = smov [#allocation2]   ;;  %s3550_s29 = int_to_ptr.vmem [resolvable:$true] %s1884_s29 }
  0x1b   : > { %2214 = vmatprep.mubr.msk.f32.mxu0 %vm316_vm1, %v279_v4  ;;  %2259 = vmatprep.mubr.msk.f32.mxu1 %vm316_vm1, %v2690_v5  ;;  %v2697_v7 = vld [vmem:[%s2686_s8 + $0x108] sm:$0xff]  ;;  %v2703_v9 = vld [vmem:[%s2686_s8 + $0x20] sm:$0xff]  ;;  %v2718_v13 = vld [vmem:[%s2686_s8 + $0x30] sm:$0xff]  ;;  %3639 = vst [vmem:[#allocation12_spill] sm:$0xff] %v2968_v52  ;;  %s2508_s14 = scalar_lea.vmem %s3550_s29, 4096  ;;  %s2512_s16 = sshll.u32 %s2572_s15, 4  ;;  %s2513_s16 = int_to_ptr.vmem [resolvable:$false] %s2512_s16 }
  0x1c   : > { %2215 = vmatmul.mubr.msk.f32.vlgmr.msra.gmra.mxu0 %vm316_vm1, %v280_v6  ;;  %2260 = vmatmul.mubr.msk.f32.vlgmr.msra.gmra.mxu1 %vm316_vm1, %v2697_v7  ;;  %v277_v10 = vld [vmem:[%s2686_s8] sm:$0xff]  ;;  %v2712_v11 = vld [vmem:[%s2686_s8 + $0x28] sm:$0xff]  ;;  %v2731_v15 = vld [vmem:[%s2686_s8 + $0x38] sm:$0xff]  ;;  %3640 = vst [vmem:[#allocation13_spill] sm:$0xff] %v2975_v53  ;;  %p2509_p11 = scmp.ne.s32.totalorder %s3550_s29, %s2508_s14  ;;  %s2514_s17 = scalar_lea.vmem %s2513_s16, 8192 }
  0x1d   : > { %2315 = vmatpush3.msk.msra.mxu0 %vm413_vm0, %v2021_v2  ;;  %2263 = vmatpush3.msk.msra.mxu1 %vm413_vm0, %v310_v3  ;;  %v278_v12 = vld [vmem:[%s2686_s8 + $0x8] sm:$0xff]  ;;  %v2734_v16 = vld [vmem:[%s2686_s8 + $0x40] sm:$0xff]  ;;  %v2747_v18 = vld [vmem:[%s2686_s8 + $0x50] sm:$0xff]  ;;  %p2515_p0 = scmp.lt.s32.totalorder %s3550_s29, %s2513_s16  ;;  %p2516_p1 = scmp.lt.s32.totalorder %s2514_s17, %s2508_s14 }
  0x1e   : > { %2264 = vmatprep.subr.mxu1 %v309_v8  ;;  %2217 = vmatprep.mubr.msk.f32.mxu0 %vm316_vm1, %v2703_v9  ;;  %v2744_v17 = vld [vmem:[%s2686_s8 + $0x48] sm:$0xff]  ;;  %v2758_v19 = vld [vmem:[%s2686_s8 + $0x58] sm:$0xff]  ;;  %v2761_v20 = vld [vmem:[%s2686_s8 + $0x60] sm:$0xff]  ;;  %p2510_p12 = pnand %p2509_p11, %p2653_p5 }
  0x1f   : > { %2265 = vmatpush3.msra.mxu1 %v309_v8  ;;  %2266 = vmatprep.mubr.msk.f32.mxu1 %vm316_vm1, %v277_v10  ;;  %v2772_v21 = vld [vmem:[%s2686_s8 + $0x68] sm:$0xff]  ;;  %v2775_v22 = vld [vmem:[%s2686_s8 + $0x70] sm:$0xff]  ;;  %v2786_v23 = vld [vmem:[%s2686_s8 + $0x78] sm:$0xff]  ;;  %p2517_p2 = por %p2516_p1, %p2515_p0 }
  0x20   : > { %2218 = vmatmul.mubr.msk.f32.gmra.mxu0 %vm316_vm1, %v2712_v11  ;;  %2267 = vmatmul.mubr.msk.f32.vlgmr.msra.gmra.mxu1 %vm316_vm1, %v278_v12  ;;  %v2789_v24 = vld [vmem:[%s2686_s8 + $0x80] sm:$0xff]  ;;  %v294_v25 = vld [vmem:[%s2686_s8 + $0x88] sm:$0xff]  ;;  %v295_v26 = vld [vmem:[%s2686_s8 + $0x90] sm:$0xff]  ;;  %p2511_p13 = pneg %p2510_p12 }
  0x21   : > { %2220 = vmatprep.mubr.msk.f32.mxu0 %vm316_vm1, %v2718_v13  ;;  %2269 = vmatprep.mubr.msk.f32.mxu1 %vm316_vm1, %v279_v4  ;;  %v296_v27 = vld [vmem:[%s2686_s8 + $0x98] sm:$0xff]  ;;  %v297_v28 = vld [vmem:[%s2686_s8 + $0xa0] sm:$0xff]  ;;  %v298_v29 = vld [vmem:[%s2686_s8 + $0xa8] sm:$0xff] }
  0x22   : > { %2316 = vmatprep.subr.mxu0 %v2020_v14  ;;  %v299_v30 = vld [vmem:[%s2686_s8 + $0xb0] sm:$0xff]  ;;  %v300_v31 = vld [vmem:[%s2686_s8 + $0xb8] sm:$0xff]  ;;  %v301_v32 = vld [vmem:[%s2686_s8 + $0xc0] sm:$0xff]  ;;  %2366 = vmatprep.subr.mxu1 %v3614_v43  ;;  %p2518_p3 = pnand %p2517_p2, %p2511_p13 }
  0x23   : > { %2317 = vmatpush3.msra.mxu0 %v2020_v14  ;;  %v302_v33 = vld [vmem:[%s2686_s8 + $0xc8] sm:$0xff]  ;;  %v303_v34 = vld [vmem:[%s2686_s8 + $0xd0] sm:$0xff]  ;;  %v304_v35 = vld [vmem:[%s2686_s8 + $0xd8] sm:$0xff]  ;;  %2367 = vmatpush3.msra.mxu1 %v2904_v42 }
  0x24   : > { %2221 = vmatmul.mubr.msk.f32.gmra.mxu0 %vm316_vm1, %v2731_v15  ;;  %2270 = vmatmul.mubr.msk.f32.gmra.mxu1 %vm316_vm1, %v280_v6  ;;  %v305_v36 = vld [vmem:[%s2686_s8 + $0xe0] sm:$0xff]  ;;  %v306_v37 = vld [vmem:[%s2686_s8 + $0xe8] sm:$0xff]  ;;  %v307_v38 = vld [vmem:[%s2686_s8 + $0xf0] sm:$0xff] }
  0x25   : > { %2223 = vmatprep.mubr.msk.f32.mxu0 %vm316_vm1, %v2734_v16  ;;  %2272 = vmatprep.mubr.msk.f32.mxu1 %vm316_vm1, %v2703_v9  ;;  %v308_v39 = vld [vmem:[%s2686_s8 + $0xf8] sm:$0xff]  ;;  %v906_v40 = vld [vmem:[%s2686_s8 + $0x110] sm:$0xff]  ;;  %v2996_v62 = vld [vmem:[%s3611_s5 + $0x20] sm:$0xff] }
  0x26   : > { %v907_v41 = vld [vmem:[%s2686_s8 + $0x118] sm:$0xff]  ;;  %2368 = vmatprep.subr.mxu1 %v3614_v43  ;;  %3641 = vst [vmem:[#allocation14_spill] sm:$0xff] %v2996_v62  ;;  %v3016_v4 = vld [vmem:[%s3611_s5 + $0x10] sm:$0xff]  ;;  %v3032_v8 = vld [vmem:[%s3611_s5] sm:$0xff] }
  0x27   : > { %2369 = vmatpush3.msra.mxu1 %v2912_v44  ;;  %v3007_v1 = vld [vmem:[%s3611_s5 + $0x18] sm:$0xff]  ;;  %3643 = vst [vmem:[#allocation16_spill] sm:$0xff] %v3016_v4  ;;  %3645 = vst [vmem:[#allocation18_spill] sm:$0xff] %v3032_v8 }
  0x28   : > { %2224 = vmatmul.mubr.msk.f32.gmra.mxu0 %vm316_vm1, %v2744_v17  ;;  %2273 = vmatmul.mubr.msk.f32.gmra.mxu1 %vm316_vm1, %v2712_v11  ;;  %3642 = vst [vmem:[#allocation15_spill] sm:$0xff] %v3007_v1 }
  0x29   : > { %2226 = vmatprep.mubr.msk.f32.mxu0 %vm316_vm1, %v2747_v18  ;;  %2275 = vmatprep.mubr.msk.f32.mxu1 %vm316_vm1, %v2718_v13 }
  0x2a   : > { %2370 = vmatprep.subr.mxu1 %v3614_v43 }
  0x2b   : > { %2371 = vmatpush3.msra.mxu1 %v2919_v45 }
  0x2c   : > { %2227 = vmatmul.mubr.msk.f32.gmra.mxu0 %vm316_vm1, %v2758_v19  ;;  %2276 = vmatmul.mubr.msk.f32.gmra.mxu1 %vm316_vm1, %v2731_v15 }
  0x2d   : > { %2229 = vmatprep.mubr.msk.f32.mxu0 %vm316_vm1, %v2761_v20  ;;  %2278 = vmatprep.mubr.msk.f32.mxu1 %vm316_vm1, %v2734_v16 }
  0x2e   : > { %2372 = vmatprep.subr.mxu1 %v3614_v43 }
  0x2f   : > { %2373 = vmatpush3.msra.mxu1 %v2926_v46 }
  0x30   : > { %2230 = vmatmul.mubr.msk.f32.gmra.mxu0 %vm316_vm1, %v2772_v21  ;;  %2279 = vmatmul.mubr.msk.f32.gmra.mxu1 %vm316_vm1, %v2744_v17 }
  0x31   : > { %2232 = vmatprep.mubr.msk.f32.mxu0 %vm316_vm1, %v2775_v22  ;;  %2281 = vmatprep.mubr.msk.f32.mxu1 %vm316_vm1, %v2747_v18 }
  0x32   : > { %2374 = vmatprep.subr.mxu1 %v3614_v43 }
  0x33   : > { %2375 = vmatpush3.msra.mxu1 %v2933_v47 }
  0x34   : > { %2233 = vmatmul.mubr.msk.f32.gmra.mxu0 %vm316_vm1, %v2786_v23  ;;  %2282 = vmatmul.mubr.msk.f32.gmra.mxu1 %vm316_vm1, %v2758_v19 }
  0x35   : > { %2235 = vmatprep.mubr.msk.f32.mxu0 %vm316_vm1, %v2789_v24  ;;  %2284 = vmatprep.mubr.msk.f32.mxu1 %vm316_vm1, %v2761_v20 }
  0x36   : > { %2376 = vmatprep.subr.mxu1 %v3614_v43 }
  0x37   : > { %2377 = vmatpush3.msra.mxu1 %v2940_v48 }
  0x38   : > { %2236 = vmatmul.mubr.msk.f32.gmra.mxu0 %vm316_vm1, %v294_v25  ;;  %2285 = vmatmul.mubr.msk.f32.gmra.mxu1 %vm316_vm1, %v2772_v21 }
  0x39   : > { %2238 = vmatprep.mubr.msk.f32.mxu0 %vm316_vm1, %v295_v26  ;;  %2287 = vmatprep.mubr.msk.f32.mxu1 %vm316_vm1, %v2775_v22 }
  0x3a   : > { %2378 = vmatprep.subr.mxu1 %v3614_v43 }
  0x3b   : > { %2379 = vmatpush3.msra.mxu1 %v2947_v49  ;;  %v3112_v49 = vld [vmem:[%s3608_s2] ss:$0 sm:$0xff] }
  0x3c   : > { %2239 = vmatmul.mubr.msk.f32.gmra.mxu0 %vm316_vm1, %v296_v27  ;;  %2288 = vmatmul.mubr.msk.f32.gmra.mxu1 %vm316_vm1, %v2786_v23 }
  0x3d   : > { %2241 = vmatprep.mubr.msk.f32.mxu0 %vm316_vm1, %v297_v28  ;;  %2290 = vmatprep.mubr.msk.f32.mxu1 %vm316_vm1, %v2789_v24 }
  0x3e   : > { %2380 = vmatprep.subr.mxu1 %v3614_v43 }
  0x3f   : > { %2381 = vmatpush3.msra.mxu1 %v2954_v50 }
  0x40   : > { %2242 = vmatmul.mubr.msk.f32.gmra.mxu0 %vm316_vm1, %v298_v29  ;;  %2291 = vmatmul.mubr.msk.f32.gmra.mxu1 %vm316_vm1, %v294_v25 }
  0x41   : > { %2244 = vmatprep.mubr.msk.f32.mxu0 %vm316_vm1, %v299_v30  ;;  %2293 = vmatprep.mubr.msk.f32.mxu1 %vm316_vm1, %v295_v26 }
  0x42   : > { %2382 = vmatprep.subr.mxu1 %v3614_v43 }
  0x43   : > { %2383 = vmatpush3.msra.mxu1 %v2961_v51 }
  0x44   : > { %2245 = vmatmul.mubr.msk.f32.gmra.mxu0 %vm316_vm1, %v300_v31  ;;  %2294 = vmatmul.mubr.msk.f32.gmra.mxu1 %vm316_vm1, %v296_v27 }
  0x45   : > { %2247 = vmatprep.mubr.msk.f32.mxu0 %vm316_vm1, %v301_v32  ;;  %2296 = vmatprep.mubr.msk.f32.mxu1 %vm316_vm1, %v297_v28 }
  0x46   : > { %2384 = vmatprep.subr.mxu1 %v3614_v43 }
  0x47   : > { %2385 = vmatpush3.msra.mxu1 %v2968_v52 }
  0x48   : > { %2248 = vmatmul.mubr.msk.f32.gmra.mxu0 %vm316_vm1, %v302_v33  ;;  %2297 = vmatmul.mubr.msk.f32.gmra.mxu1 %vm316_vm1, %v298_v29 }
  0x49   : > { %2250 = vmatprep.mubr.msk.f32.mxu0 %vm316_vm1, %v303_v34  ;;  %2299 = vmatprep.mubr.msk.f32.mxu1 %vm316_vm1, %v299_v30 }
  0x4a   : > { %2386 = vmatprep.subr.mxu1 %v3614_v43 }
  0x4b   : > { %2387 = vmatpush3.msra.mxu1 %v2975_v53 }
  0x4c   : > { %2251 = vmatmul.mubr.msk.f32.gmra.mxu0 %vm316_vm1, %v304_v35  ;;  %2300 = vmatmul.mubr.msk.f32.gmra.mxu1 %vm316_vm1, %v300_v31 }
  0x4d   : > { %2253 = vmatprep.mubr.msk.f32.mxu0 %vm316_vm1, %v305_v36  ;;  %2302 = vmatprep.mubr.msk.f32.mxu1 %vm316_vm1, %v301_v32 }
  0x4e   : > { %2388 = vmatprep.subr.mxu1 %v3614_v43 }
  0x4f   : > { %2389 = vmatpush3.msra.mxu1 %v2996_v62 }
  0x50   : > { %2254 = vmatmul.mubr.msk.f32.gmra.mxu0 %vm316_vm1, %v306_v37  ;;  %2303 = vmatmul.mubr.msk.f32.gmra.mxu1 %vm316_vm1, %v302_v33 }
  0x51   : > { %2256 = vmatprep.mubr.msk.f32.mxu0 %vm316_vm1, %v307_v38  ;;  %2305 = vmatprep.mubr.msk.f32.mxu1 %vm316_vm1, %v303_v34 }
  0x52   : > { %2390 = vmatprep.subr.mxu1 %v3614_v43 }
  0x53   : > { %2391 = vmatpush3.msra.mxu1 %v3007_v1 }
  0x54   : > { %2257 = vmatmul.mubr.msk.f32.gmra.mxu0 %vm316_vm1, %v308_v39  ;;  %2306 = vmatmul.mubr.msk.f32.gmra.mxu1 %vm316_vm1, %v304_v35 }
  0x55   : > { %2308 = vmatprep.mubr.msk.f32.mxu1 %vm316_vm1, %v305_v36  ;;  %2318 = vmatprep.mubr.msk.f32.mxu0 %vm316_vm1, %v2703_v9 }
  0x56   : > { %2392 = vmatprep.subr.mxu1 %v3614_v43 }
  0x57   : > { %2393 = vmatpush3.msra.mxu1 %v3016_v4 }
  0x58   : > { %2309 = vmatmul.mubr.msk.f32.gmra.mxu1 %vm316_vm1, %v306_v37  ;;  %2319 = vmatmul.mubr.msk.f32.vlgmr.msra.gmra.mxu0 %vm316_vm1, %v2712_v11 }
  0x59   : > { %2311 = vmatprep.mubr.msk.f32.mxu1 %vm316_vm1, %v307_v38  ;;  %2321 = vmatprep.mubr.msk.f32.mxu0 %vm316_vm1, %v2718_v13 }
  0x5a   : > { %2394 = vmatprep.subr.mxu1 %v3614_v43 }
  0x5c   : > { %2312 = vmatmul.mubr.msk.f32.gmra.mxu1 %vm316_vm1, %v308_v39  ;;  %2322 = vmatmul.mubr.msk.f32.gmra.mxu0 %vm316_vm1, %v2731_v15 }
  0x5d   : > { %2324 = vmatprep.mubr.msk.f32.mxu0 %vm316_vm1, %v2734_v16  ;;  %2398 = vmatprep.mubr.msk.f32.mxu1 %vm2571_vm2, %v3614_v43 }
  0x60   : > { %2325 = vmatmul.mubr.msk.f32.gmra.mxu0 %vm316_vm1, %v2744_v17 }
  0x61   : > { %2327 = vmatprep.mubr.msk.f32.mxu0 %vm316_vm1, %v2747_v18 }
  0x64   : > { %2328 = vmatmul.mubr.msk.f32.gmra.mxu0 %vm316_vm1, %v2758_v19 }
  0x65   : > { %2330 = vmatprep.mubr.msk.f32.mxu0 %vm316_vm1, %v2761_v20 }
  0x68   : > { %2331 = vmatmul.mubr.msk.f32.gmra.mxu0 %vm316_vm1, %v2772_v21 }
  0x69   : > { %2333 = vmatprep.mubr.msk.f32.mxu0 %vm316_vm1, %v2775_v22 }
  0x6c   : > { %2334 = vmatmul.mubr.msk.f32.gmra.mxu0 %vm316_vm1, %v2786_v23 }
  0x6d   : > { %2336 = vmatprep.mubr.msk.f32.mxu0 %vm316_vm1, %v2789_v24 }
  0x70   : > { %2337 = vmatmul.mubr.msk.f32.gmra.mxu0 %vm316_vm1, %v294_v25 }
  0x71   : > { %2339 = vmatprep.mubr.msk.f32.mxu0 %vm316_vm1, %v295_v26 }
  0x74   : > { %2340 = vmatmul.mubr.msk.f32.gmra.mxu0 %vm316_vm1, %v296_v27 }
  0x75   : > { %2342 = vmatprep.mubr.msk.f32.mxu0 %vm316_vm1, %v297_v28 }
  0x78   : > { %2343 = vmatmul.mubr.msk.f32.gmra.mxu0 %vm316_vm1, %v298_v29 }
  0x79   : > { %2345 = vmatprep.mubr.msk.f32.mxu0 %vm316_vm1, %v299_v30 }
  0x7c   : > { %2346 = vmatmul.mubr.msk.f32.gmra.mxu0 %vm316_vm1, %v300_v31 }
  0x7d   : > { %2348 = vmatprep.mubr.msk.f32.mxu0 %vm316_vm1, %v301_v32 }
  0x80   : > { %2349 = vmatmul.mubr.msk.f32.gmra.mxu0 %vm316_vm1, %v302_v33 }
  0x81   : > { %2351 = vmatprep.mubr.msk.f32.mxu0 %vm316_vm1, %v303_v34 }
  0x84   : > { %2352 = vmatmul.mubr.msk.f32.gmra.mxu0 %vm316_vm1, %v304_v35 }
  0x85   : > { %2354 = vmatprep.mubr.msk.f32.mxu0 %vm316_vm1, %v305_v36 }
  0x88   : > { %2355 = vmatmul.mubr.msk.f32.gmra.mxu0 %vm316_vm1, %v306_v37 }
  0x89   : > { %2357 = vmatprep.mubr.msk.f32.mxu0 %vm316_vm1, %v307_v38 }
  0x8c   : > { %2358 = vmatmul.mubr.msk.f32.gmra.mxu0 %vm316_vm1, %v308_v39 }
  0x8d   : > { %2360 = vmatprep.mubr.msk.f32.mxu0 %vm316_vm1, %v2690_v5  ;;  %v3021_v5 = vld [vmem:[%s3611_s5 + $0x8] sm:$0xff] }
  0x8e   : > { %3644 = vst [vmem:[#allocation17_spill] sm:$0xff] %v3021_v5  ;;  %2395 = vmatpush3.msra.mxu1 %v3021_v5 }
  0x8f   : > { %2396 = vmatprep.subr.mxu1 %v3614_v43 }
  0x90   : > { %2361 = vmatmul.mubr.msk.f32.gmra.mxu0 %vm316_vm1, %v2697_v7  ;;  %2397 = vmatpush3.msra.mxu1 %v3032_v8 }
  0x91   : > { %2363 = vmatprep.mubr.msk.f32.mxu0 %vm316_vm1, %v906_v40  ;;  %2401 = vmatprep.subr.mxu1 %v3614_v43 }
  0x94   : > { %2364 = vmatmul.mubr.msk.f32.gmra.mxu0 %vm316_vm1, %v907_v41 }
  0xdc   : > { %v2978_v54 = vpop.f32.mrf.mxu0  ;;  %v2980_v55 = vpop.f32.mrf.mxu1 }
  0xde   : > { %v2983_v56 = vpop.f32.mrf.mxu0  ;;  %v2985_v57 = vpop.f32.mrf.mxu1 }
  0xe0   : > { %v2987_v58 = vpop.f32.mrf.mxu0  ;;  %v2989_v59 = vpop.f32.mrf.mxu1 }
  0xe1   : > { %v723_v1 = vadd.f32 %v2989_v59, %v2978_v54 }
  0xe2   : > { %v2991_v60 = vpop.f32.mrf.mxu0  ;;  %v717_v61 = vpop.f32.mrf.mxu1 }
  0xe3   : > { %v718_v4 = vadd.f32 %v717_v61, %v2983_v56 }
  0xe4   : > { %v2999_v63 = vpop.f32.mrf.mxu0  ;;  %v3001_v0 = vpop.f32.mrf.mxu1 }
  0xe5   : > { %v733_v48 = vadd.f32 %v3001_v0, %v2987_v58 }
  0xe6   : > { %v3010_v2 = vpop.f32.mrf.mxu0  ;;  %v727_v3 = vpop.f32.mrf.mxu1 }
  0xe7   : > { %v728_v47 = vadd.f32 %v727_v3, %v2991_v60 }
  0xe8   : > { %v3026_v6 = vpop.f32.mrf.mxu0  ;;  %v2274_v7 = vpop.f32.mrf.mxu1 }
  0xe9   : > { %v743_v46 = vadd.f32 %v2274_v7, %v2999_v63 }
  0xea   : > { %v3035_v9 = vpop.f32.mrf.mxu0  ;;  %v737_v10 = vpop.f32.mrf.mxu1 }
  0xec   : > { %v3039_v11 = vpop.f32.mrf.mxu0  ;;  %v3042_v12 = vpop.f32.mrf.mxu1 }
  0xed   : > { %v753_v3 = vadd.f32 %v3042_v12, %v3026_v6 }
  0xee   : > { %v3044_v13 = vpop.f32.mrf.mxu0  ;;  %v747_v15 = vpop.f32.mrf.mxu1 }
  0xf0   : > { %v3046_v14 = vpop.f32.mrf.mxu0  ;;  %v3052_v18 = vpop.f32.mrf.mxu1 }
  0xf1   : > { %v763_v6 = vadd.f32 %v3052_v18, %v3039_v11 }
  0xf2   : > { %v3048_v16 = vpop.f32.mrf.mxu0  ;;  %v3058_v21 = vpop.f32.mrf.mxu1 }
  0xf4   : > { %v3050_v17 = vpop.f32.mrf.mxu0  ;;  %v3064_v24 = vpop.f32.mrf.mxu1 }
  0xf5   : > { %v773_v11 = vadd.f32 %v3064_v24, %v3046_v14 }
  0xf6   : > { %v3054_v19 = vpop.f32.mrf.mxu0  ;;  %v3070_v27 = vpop.f32.mrf.mxu1 }
  0xf8   : > { %v3056_v20 = vpop.f32.mrf.mxu0  ;;  %v3076_v30 = vpop.f32.mrf.mxu1 }
  0xf9   : > { %v783_v14 = vadd.f32 %v3076_v30, %v3050_v17 }
  0xfa   : > { %v3060_v22 = vpop.f32.mrf.mxu0  ;;  %v3082_v33 = vpop.f32.mrf.mxu1 }
  0xfc   : > { %v3062_v23 = vpop.f32.mrf.mxu0  ;;  %v3088_v36 = vpop.f32.mrf.mxu1 }
  0xfd   : > { %v793_v17 = vadd.f32 %v3088_v36, %v3056_v20 }
  0xfe   : > { %v3066_v25 = vpop.f32.mrf.mxu0  ;;  %v3094_v39 = vpop.f32.mrf.mxu1 }
 0x100   : > { %v3068_v26 = vpop.f32.mrf.mxu0  ;;  %v3100_v43 = vpop.f32.mrf.mxu1 }
 0x101   : > { %v803_v20 = vadd.f32 %v3100_v43, %v3062_v23 }
 0x102   : > { %v3072_v28 = vpop.f32.mrf.mxu0  ;;  %v3107_v62 = vpop.f32.mrf.mxu1 }
 0x104   : > { %v3074_v29 = vpop.f32.mrf.mxu0  ;;  %v3117_v56 = vpop.f32.mrf.mxu1 }
 0x105   : > { %v813_v43 = vadd.f32 %v3117_v56, %v3068_v26 }
 0x106   : > { %v3078_v31 = vpop.f32.mrf.mxu0  ;;  %v3127_v45 = vpop.f32.mrf.mxu1 }
 0x108   : > { %v3080_v32 = vpop.f32.mrf.mxu0  ;;  %v3144_v7 = vpop.f32.mrf.mxu1 }
 0x109   : > { %v823_v26 = vadd.f32 %v3144_v7, %v3074_v29 }
 0x10a   : > { %v3084_v34 = vpop.f32.mrf.mxu0  ;;  %v3158_v12 = vpop.f32.mrf.mxu1 }
 0x10c   : > { %v3086_v35 = vpop.f32.mrf.mxu0  ;;  %v3172_v18 = vpop.f32.mrf.mxu1 }
 0x10d   : > { %v833_v29 = vadd.f32 %v3172_v18, %v3080_v32 }
 0x10e   : > { %v3090_v37 = vpop.f32.mrf.mxu0  ;;  %v827_v24 = vpop.f32.mrf.mxu1 }
 0x110   : > { %v3092_v38 = vpop.f32.mrf.mxu0  ;;  %v2304_v30 = vpop.f32.mrf.mxu1 }
 0x112   : > { %v3096_v40 = vpop.f32.mrf.mxu0  ;;  %v837_v36 = vpop.f32.mrf.mxu1 }
 0x114   : > { %v3098_v41 = vpop.f32.mrf.mxu0  ;;  %v2307_v23 = vpop.f32.mrf.mxu1 }
 0x116   : > { %v3102_v8 = vpop.f32.mrf.mxu0  ;;  %v847_v56 = vpop.f32.mrf.mxu1 }
 0x118   : > { %v2320_v5 = vpop.f32.mrf.mxu0  ;;  %v2310_v7 = vpop.f32.mrf.mxu1 }
 0x119   : > { %v1236_v51 = vadd.f32 %v2320_v5, %v723_v1  ;;  %v738_v5 = vadd.f32 %v737_v10, %v3010_v2  ;;  %v748_v2 = vadd.f32 %v747_v15, %v3035_v9  ;;  %v758_v9 = vadd.f32 %v3058_v21, %v3044_v13 }
 0x11a   : > { %v1076_v53 = vpop.f32.mrf.mxu0  ;;  %v768_v13 = vadd.f32 %v3070_v27, %v3048_v16  ;;  %v778_v16 = vadd.f32 %v3082_v33, %v3054_v19  ;;  %v788_v19 = vadd.f32 %v3094_v39, %v3060_v22  ;;  %v798_v22 = vadd.f32 %v3107_v62, %v3066_v25  ;;  %v857_v32 = vpop.f32.mrf.mxu1 }
 0x11b   : > { %v1235_v52 = vadd.f32 %v1076_v53, %v718_v4  ;;  %v3123_v53 = vadd.f32 %v3112_v49, %v1236_v51  ;;  %v808_v62 = vadd.f32 %v3127_v45, %v3072_v28  ;;  %v818_v45 = vadd.f32 %v3158_v12, %v3078_v31 }
 0x11c   : > { %v2323_v50 = vpop.f32.mrf.mxu0  ;;  %v828_v31 = vadd.f32 %v827_v24, %v3084_v34  ;;  %v838_v34 = vadd.f32 %v837_v36, %v3090_v37  ;;  %v853_v36 = vadd.f32 %v2307_v23, %v3092_v38 }
 0x11d   : > { %v3120_v54 = vadd.f32 %v3112_v49, %v1235_v52  ;;  %v1238_v61 = vadd.f32 %v2323_v50, %v733_v48 }
 0x11e   : > { %v1086_v59 = vpop.f32.mrf.mxu0 }
 0x11f   : > { %v1237_v1 = vadd.f32 %v1086_v59, %v728_v47  ;;  %v1306_v58 = vadd.f32 %v3123_v53, %v3120_v54  ;;  %v3135_v51 = vadd.f32 %v3112_v49, %v1238_v61 }
 0x120   : > { %v2326_v4 = vpop.f32.mrf.mxu0 }
 0x121   : > { %v3132_v60 = vadd.f32 %v3112_v49, %v1237_v1  ;;  %v1240_v48 = vadd.f32 %v2326_v4, %v743_v46 }
 0x122   : > { %v1096_v52 = vpop.f32.mrf.mxu0 }
 0x123   : > { %v1239_v0 = vadd.f32 %v1096_v52, %v738_v5  ;;  %v1307_v47 = vadd.f32 %v1306_v58, %v3132_v60  ;;  %v3148_v61 = vadd.f32 %v3112_v49, %v1240_v48 }
 0x124   : > { %v2329_v50 = vpop.f32.mrf.mxu0 }
 0x125   : > { %v3140_v63 = vadd.f32 %v3112_v49, %v1239_v0  ;;  %v1308_v10 = vadd.f32 %v1307_v47, %v3135_v51  ;;  %v1242_v4 = vadd.f32 %v2329_v50, %v753_v3 }
 0x126   : > { %v1106_v59 = vpop.f32.mrf.mxu0 }
 0x127   : > { %v1241_v1 = vadd.f32 %v1106_v59, %v748_v2  ;;  %v1309_v46 = vadd.f32 %v1308_v10, %v3140_v63  ;;  %v3162_v47 = vadd.f32 %v3112_v49, %v1242_v4 }
 0x128   : > { %v2332_v5 = vpop.f32.mrf.mxu0 }
 0x129   : > { %v3154_v15 = vadd.f32 %v3112_v49, %v1241_v1  ;;  %v1310_v58 = vadd.f32 %v1309_v46, %v3148_v61  ;;  %v1244_v50 = vadd.f32 %v2332_v5, %v763_v6 }
 0x12a   : > { %v1116_v52 = vpop.f32.mrf.mxu0 }
 0x12b   : > { %v1243_v0 = vadd.f32 %v1116_v52, %v758_v9  ;;  %v1311_v48 = vadd.f32 %v1310_v58, %v3154_v15  ;;  %v3176_v1 = vadd.f32 %v3112_v49, %v1244_v50 }
 0x12c   : > { %v2335_v2 = vpop.f32.mrf.mxu0 }
 0x12d   : > { %v3168_v21 = vadd.f32 %v3112_v49, %v1243_v0  ;;  %v1312_v3 = vadd.f32 %v1311_v48, %v3162_v47  ;;  %v1246_v4 = vadd.f32 %v2335_v2, %v773_v11 }
 0x12e   : > { %v1126_v10 = vpop.f32.mrf.mxu0 }
 0x12f   : > { %v1245_v59 = vadd.f32 %v1126_v10, %v768_v13  ;;  %v1313_v46 = vadd.f32 %v1312_v3, %v3168_v21  ;;  %v3188_v52 = vadd.f32 %v3112_v49, %v1246_v4 }
 0x130   : > { %v2338_v5 = vpop.f32.mrf.mxu0 }
 0x131   : > { %v3182_v27 = vadd.f32 %v3112_v49, %v1245_v59  ;;  %v1314_v9 = vadd.f32 %v1313_v46, %v3176_v1  ;;  %v1248_v48 = vadd.f32 %v2338_v5, %v783_v14 }
 0x132   : > { %v1136_v6 = vpop.f32.mrf.mxu0 }
 0x133   : > { %v1247_v58 = vadd.f32 %v1136_v6, %v778_v16  ;;  %v1315_v0 = vadd.f32 %v1314_v9, %v3182_v27  ;;  %v3200_v3 = vadd.f32 %v3112_v49, %v1248_v48 }
 0x134   : > { %v2341_v50 = vpop.f32.mrf.mxu0 }
 0x135   : > { %v3194_v33 = vadd.f32 %v3112_v49, %v1247_v58  ;;  %v1316_v2 = vadd.f32 %v1315_v0, %v3188_v52  ;;  %v1250_v59 = vadd.f32 %v2341_v50, %v793_v17 }
 0x136   : > { %v1146_v13 = vpop.f32.mrf.mxu0 }
 0x137   : > { %v1249_v11 = vadd.f32 %v1146_v13, %v788_v19  ;;  %v1317_v10 = vadd.f32 %v1316_v2, %v3194_v33  ;;  %v3212_v14 = vadd.f32 %v3112_v49, %v1250_v59 }
 0x138   : > { %v2344_v46 = vpop.f32.mrf.mxu0 }
 0x139   : > { %v3206_v39 = vadd.f32 %v3112_v49, %v1249_v11  ;;  %v1318_v4 = vadd.f32 %v1317_v10, %v3200_v3  ;;  %v1252_v6 = vadd.f32 %v2344_v46, %v803_v20 }
 0x13a   : > { %v1156_v5 = vpop.f32.mrf.mxu0 }
 0x13b   : > { %v1251_v16 = vadd.f32 %v1156_v5, %v798_v22  ;;  %v1319_v9 = vadd.f32 %v1318_v4, %v3206_v39  ;;  %v3224_v19 = vadd.f32 %v3112_v49, %v1252_v6 }
 0x13c   : > { %v2347_v58 = vpop.f32.mrf.mxu0 }
 0x13d   : > { %v3218_v25 = vadd.f32 %v3112_v49, %v1251_v16  ;;  %v1320_v0 = vadd.f32 %v1319_v9, %v3212_v14  ;;  %v1254_v2 = vadd.f32 %v2347_v58, %v813_v43 }
 0x13e   : > { %v1166_v48 = vpop.f32.mrf.mxu0 }
 0x13f   : > { %v1253_v50 = vadd.f32 %v1166_v48, %v808_v62  ;;  %v1321_v17 = vadd.f32 %v1320_v0, %v3218_v25  ;;  %v3236_v46 = vadd.f32 %v3112_v49, %v1254_v2  ;;  %v843_v0 = vadd.f32 %v2304_v30, %v3086_v35  ;;  %v2313_v35 = vpop.f32.mrf.mxu1 }
 0x140   : > { %v2350_v13 = vpop.f32.mrf.mxu0 }
 0x141   : > { %v3230_v28 = vadd.f32 %v3112_v49, %v1253_v50  ;;  %v1322_v11 = vadd.f32 %v1321_v17, %v3224_v19  ;;  %v1256_v20 = vadd.f32 %v2350_v13, %v823_v26  ;;  %v848_v26 = vadd.f32 %v847_v56, %v3096_v40  ;;  %v867_v38 = vpop.f32.mrf.mxu1 }
 0x142   : > { %v1176_v10 = vpop.f32.mrf.mxu0  ;;  %v863_v56 = vadd.f32 %v2310_v7, %v3098_v41 }
 0x143   : > { %v1255_v59 = vadd.f32 %v1176_v10, %v818_v45  ;;  %v1323_v22 = vadd.f32 %v1322_v11, %v3230_v28  ;;  %v3247_v6 = vadd.f32 %v3112_v49, %v1256_v20 }
 0x144   : > { %v2353_v4 = vpop.f32.mrf.mxu0 }
 0x145   : > { %v3241_v12 = vadd.f32 %v3112_v49, %v1255_v59  ;;  %v1324_v5 = vadd.f32 %v1323_v22, %v3236_v46  ;;  %v1258_v62 = vadd.f32 %v2353_v4, %v833_v29 }
 0x146   : > { %v1186_v16 = vpop.f32.mrf.mxu0 }
 0x147   : > { %v1257_v9 = vadd.f32 %v1186_v16, %v828_v31  ;;  %v1325_v58 = vadd.f32 %v1324_v5, %v3241_v12  ;;  %v3257_v17 = vadd.f32 %v3112_v49, %v1258_v62  ;;  %v858_v31 = vadd.f32 %v857_v32, %v3102_v8 }
 0x148   : > { %v2356_v43 = vpop.f32.mrf.mxu0 }
 0x149   : > { %v3252_v24 = vadd.f32 %v3112_v49, %v1257_v9  ;;  %v1326_v18 = vadd.f32 %v1325_v58, %v3247_v6  ;;  %v1260_v13 = vadd.f32 %v2356_v43, %v843_v0  ;;  %v868_v43 = vadd.f32 %v867_v38, %v2985_v57 }
 0x14a   : > { %v1196_v48 = vpop.f32.mrf.mxu0  ;;  %v1345_v38 = vmul.f32 %v3132_v60, %v3132_v60 }
 0x14b   : > { %v1259_v50 = vadd.f32 %v1196_v48, %v838_v34  ;;  %v1327_v2 = vadd.f32 %v1326_v18, %v3252_v24  ;;  %v3267_v59 = vadd.f32 %v3112_v49, %v1260_v13  ;;  %v873_v34 = vadd.f32 %v2313_v35, %v2980_v55 }
 0x14c   : > { %v2359_v45 = vpop.f32.mrf.mxu0 }
 0x14d   : > { %v3262_v37 = vadd.f32 %v3112_v49, %v1259_v50  ;;  %v1328_v30 = vadd.f32 %v1327_v2, %v3257_v17  ;;  %v1262_v20 = vadd.f32 %v2359_v45, %v853_v36 }
 0x14e   : > { %v1206_v11 = vpop.f32.mrf.mxu0 }
 0x14f   : > { %v1261_v10 = vadd.f32 %v1206_v11, %v848_v26  ;;  %v1329_v22 = vadd.f32 %v1328_v30, %v3262_v37  ;;  %v3277_v16 = vadd.f32 %v3112_v49, %v1262_v20  ;;  %v3316_v20 = vld [vmem:[%s3612_s6 + $0x8] sm:$0xff] }
 0x150   : > { %v2362_v4 = vpop.f32.mrf.mxu0 }
 0x151   : > { %v3272_v40 = vadd.f32 %v3112_v49, %v1261_v10  ;;  %v1330_v23 = vadd.f32 %v1329_v22, %v3267_v59  ;;  %v1264_v58 = vadd.f32 %v2362_v4, %v863_v56  ;;  %v3302_v10 = vld [vmem:[%s3612_s6 + $0x18] sm:$0xff]  ;;  %v3646_v22 = vmov 0.0   ;;  %v3323_v4 = vld [vmem:[%s3612_s6] sm:$0xff] }
 0x152   : > { %v1216_v29 = vpop.f32.mrf.mxu0  ;;  %v1344_v56 = vmul.f32 %v3123_v53, %v3123_v53 }
 0x153   : > { %v1263_v5 = vadd.f32 %v1216_v29, %v858_v31  ;;  %v1331_v9 = vadd.f32 %v1330_v23, %v3272_v40  ;;  %v3287_v32 = vadd.f32 %v3112_v49, %v1264_v58  ;;  %v1343_v31 = vmul.f32 %v3120_v54, %v3120_v54 }
 0x154   : > { %v2365_v62 = vpop.f32.mrf.mxu0 }
 0x155   : > { %v3282_v8 = vadd.f32 %v3112_v49, %v1263_v5  ;;  %v1332_v41 = vadd.f32 %v1331_v9, %v3277_v16  ;;  %v1266_v48 = vadd.f32 %v2365_v62, %v873_v34  ;;  %v1375_v23 = vadd.f32 %v1344_v56, %v1343_v31 }
 0x156   : > { %v1226_v7 = vpop.f32.mrf.mxu0  ;;  %v1346_v5 = vmul.f32 %v3135_v51, %v3135_v51  ;;  %v1347_v9 = vmul.f32 %v3140_v63, %v3140_v63  ;;  %v1349_v34 = vmul.f32 %v3154_v15, %v3154_v15  ;;  %v1356_v31 = vmul.f32 %v3200_v3, %v3200_v3 }
 0x157   : > { %v1265_v0 = vadd.f32 %v1226_v7, %v868_v43  ;;  %v1333_v18 = vadd.f32 %v1332_v41, %v3282_v8  ;;  %v3295_v2 = vadd.f32 %v3112_v49, %v1266_v48  ;;  %v1376_v29 = vadd.f32 %v1375_v23, %v1345_v38 }
 0x158   : > { %v1348_v43 = vmul.f32 %v3148_v61, %v3148_v61  ;;  %v1357_v56 = vmul.f32 %v3206_v39, %v3206_v39 }
 0x159   : > { %v3291_v50 = vadd.f32 %v3112_v49, %v1265_v0  ;;  %v1334_v57 = vadd.f32 %v1333_v18, %v3287_v32  ;;  %v3307_v49 = vld [vmem:[%s3612_s6 + $0x10] sm:$0xff]  ;;  %v1377_v58 = vadd.f32 %v1376_v29, %v1346_v5  ;;  %v1350_v0 = vmul.f32 %v3162_v47, %v3162_v47 }
 0x15a   : > { %v1351_v18 = vmul.f32 %v3168_v21, %v3168_v21  ;;  %v1358_v29 = vmul.f32 %v3212_v14, %v3212_v14  ;;  %v1359_v5 = vmul.f32 %v3218_v25, %v3218_v25 }
 0x15b   : > { %v1335_v55 = vadd.f32 %v1334_v57, %v3291_v50  ;;  %v1378_v62 = vadd.f32 %v1377_v58, %v1347_v9 }
 0x15d   : > { %v1336_v13 = vadd.f32 %v1335_v55, %v3295_v2  ;;  %v1379_v41 = vadd.f32 %v1378_v62, %v1348_v43  ;;  %v1352_v55 = vmul.f32 %v3176_v1, %v3176_v1  ;;  %v1360_v62 = vmul.f32 %v3224_v19, %v3224_v19 }
 0x15e   : > { %v1361_v43 = vmul.f32 %v3230_v28, %v3230_v28 }
 0x15f   : > { %v1337_v45 = vrot.slane %v1336_v13, 4  ;;  %v1380_v7 = vadd.f32 %v1379_v41, %v1349_v34 }
 0x161   : > { %v1338_v26 = vadd.f32 %v1337_v45, %v1336_v13  ;;  %v1381_v48 = vadd.f32 %v1380_v7, %v1350_v0  ;;  %v1353_v13 = vmul.f32 %v3182_v27, %v3182_v27  ;;  %v1362_v7 = vmul.f32 %v3236_v46, %v3236_v46 }
 0x162   : > { %v1363_v0 = vmul.f32 %v3241_v12, %v3241_v12 }
 0x163   : > { %v1339_v36 = vrot.slane %v1338_v26, 2  ;;  %v1382_v57 = vadd.f32 %v1381_v48, %v1351_v18 }
 0x165   : > { %v1340_v35 = vadd.f32 %v1339_v36, %v1338_v26  ;;  %v1383_v45 = vadd.f32 %v1382_v57, %v1352_v55  ;;  %v1354_v36 = vmul.f32 %v3188_v52, %v3188_v52  ;;  %v1364_v57 = vmul.f32 %v3247_v6, %v3247_v6 }
 0x166   : > { %v1365_v55 = vmul.f32 %v3252_v24, %v3252_v24 }
 0x167   : > { %v1341_v30 = vrot.slane %v1340_v35, 1  ;;  %v1384_v26 = vadd.f32 %v1383_v45, %v1353_v13 }
 0x169   : > { %v1342_v11 = vadd.f32 %v1341_v30, %v1340_v35  ;;  %v1355_v35 = vmul.f32 %v3194_v33, %v3194_v33  ;;  %v1385_v30 = vadd.f32 %v1384_v26, %v1354_v36  ;;  %v1366_v26 = vmul.f32 %v3257_v17, %v3257_v17 }
 0x16a   : > { %v1367_v36 = vmul.f32 %v3262_v37, %v3262_v37 }
 0x16b   : > { %2399 = vmatmul.mubr.f32.vlgmr.msra.gmra.mxu1 %v1342_v11  ;;  %v1386_v11 = vadd.f32 %v1385_v30, %v1355_v35 }
 0x16c   : > { %2402 = vmatpush3.msra.mxu1 %v3302_v10  ;;  %2409 = vmatprep.mubr.msk.f32.mxu1 %vm2571_vm2, %v3646_v22 }
 0x16d   : > { %2403 = vmatprep.subr.mxu1 %v3646_v22  ;;  %v1387_v38 = vadd.f32 %v1386_v11, %v1356_v31  ;;  %v1368_v11 = vmul.f32 %v3267_v59, %v3267_v59  ;;  %v1369_v31 = vmul.f32 %v3272_v40, %v3272_v40 }
 0x16e   : > { %2404 = vmatpush3.msra.mxu1 %v3307_v49 }
 0x16f   : > { %2405 = vmatprep.subr.mxu1 %v3646_v22  ;;  %v1388_v23 = vadd.f32 %v1387_v38, %v1357_v56 }
 0x170   : > { %2406 = vmatpush3.msra.mxu1 %v3316_v20 }
 0x171   : > { %2407 = vmatprep.subr.mxu1 %v3646_v22  ;;  %v1389_v9 = vadd.f32 %v1388_v23, %v1358_v29  ;;  %v1370_v23 = vmul.f32 %v3277_v16, %v3277_v16  ;;  %v1371_v29 = vmul.f32 %v3282_v8, %v3282_v8 }
 0x172   : > { %2408 = vmatpush3.msra.mxu1 %v3323_v4 }
 0x173   : > { %2412 = vmatprep.subr.mxu1 %v3646_v22  ;;  %v1390_v58 = vadd.f32 %v1389_v9, %v1359_v5 }
 0x175   : > { %v1391_v34 = vadd.f32 %v1390_v58, %v1360_v62  ;;  %v1372_v58 = vmul.f32 %v3287_v32, %v3287_v32  ;;  %v1373_v62 = vmul.f32 %v3291_v50, %v3291_v50 }
 0x177   : > { %v1392_v41 = vadd.f32 %v1391_v34, %v1361_v43 }
 0x179   : > { %v1393_v18 = vadd.f32 %v1392_v41, %v1362_v7 }
 0x17b   : > { %v1394_v48 = vadd.f32 %v1393_v18, %v1363_v0  ;;  %v1374_v0 = vmul.f32 %v3295_v2, %v3295_v2  ;;  %v3647_v18 = vld [vmem:[#allocation5_spill] sm:$0xff] }
 0x17d   : > { %v1395_v13 = vadd.f32 %v1394_v48, %v1364_v57  ;;  %v3649_v57 = vld [vmem:[#allocation7_spill] sm:$0xff] }
 0x17f   : > { %v1396_v45 = vadd.f32 %v1395_v13, %v1365_v55  ;;  %v3651_v13 = vld [vmem:[#allocation9_spill] sm:$0xff] }
 0x181   : > { %v1397_v35 = vadd.f32 %v1396_v45, %v1366_v26  ;;  %v3652_v26 = vld [vmem:[#allocation10_spill] sm:$0xff] }
 0x183   : > { %v1398_v30 = vadd.f32 %v1397_v35, %v1367_v36  ;;  %v3653_v36 = vld [vmem:[#allocation11_spill] sm:$0xff] }
 0x185   : > { %v1399_v56 = vadd.f32 %v1398_v30, %v1368_v11  ;;  %v3654_v30 = vld [vmem:[#allocation12_spill] sm:$0xff]  ;;  %v3655_v11 = vld [vmem:[#allocation13_spill] sm:$0xff] }
 0x187   : > { %v1400_v38 = vadd.f32 %v1399_v56, %v1369_v31  ;;  %v3656_v56 = vld [vmem:[#allocation14_spill] sm:$0xff] }
 0x189   : > { %v1401_v5 = vadd.f32 %v1400_v38, %v1370_v23  ;;  %v3657_v38 = vld [vmem:[#allocation15_spill] sm:$0xff] }
 0x18b   : > { %v1402_v9 = vadd.f32 %v1401_v5, %v1371_v29  ;;  %v3658_v29 = vld [vmem:[#allocation16_spill] sm:$0xff]  ;;  %v3659_v5 = vld [vmem:[#allocation17_spill] sm:$0xff] }
 0x18d   : > { %v1403_v43 = vadd.f32 %v1402_v9, %v1372_v58  ;;  %v3660_v58 = vld [vmem:[#allocation18_spill] sm:$0xff] }
 0x18f   : > { %v1404_v7 = vadd.f32 %v1403_v43, %v1373_v62 }
 0x191   : > { %v1405_v48 = vadd.f32 %v1404_v7, %v1374_v0 }
 0x193   : > { %v1406_v55 = vrot.slane %v1405_v48, 4 }
 0x195   : > { %v1407_v45 = vadd.f32 %v1406_v55, %v1405_v48 }
 0x197   : > { %v1408_v35 = vrot.slane %v1407_v45, 2 }
 0x199   : > { %v1409_v31 = vadd.f32 %v1408_v35, %v1407_v45 }
 0x19b   : > { %v1410_v23 = vrot.slane %v1409_v31, 1 }
 0x19d   : > { %v1411_v9 = vadd.f32 %v1410_v23, %v1409_v31 }
 0x22b   : > { %v1494_v34 = vpop.f32.mrf.mxu1 }
 0x22c   : > { %2410 = vmatmul.mubr.msk.f32.vlgmr.msra.gmra.mxu1 %vm1502_vm3, %v1494_v34 }
 0x22d   : > { %2413 = vmatpush3.msra.mxu1 %v2904_v42  ;;  %v2400_v41 = vpop.f32.mrf.mxu1  ;;  %2444 = vmatprep.mubr.msk.f32.mxu1 %vm2571_vm2, %v3646_v22  ;;  %v3648_v42 = vld [vmem:[#allocation6_spill] sm:$0xff] }
 0x22e   : > { %2414 = vmatprep.subr.mxu1 %v3646_v22 }
 0x22f   : > { %2415 = vmatpush3.msra.mxu1 %v2912_v44  ;;  %v3650_v44 = vld [vmem:[#allocation8_spill] sm:$0xff] }
 0x230   : > { %2416 = vmatprep.subr.mxu1 %v3646_v22 }
 0x231   : > { %2417 = vmatpush3.msra.mxu1 %v3647_v18 }
 0x232   : > { %2418 = vmatprep.subr.mxu1 %v3646_v22 }
 0x233   : > { %2419 = vmatpush3.msra.mxu1 %v3648_v42 }
 0x234   : > { %2420 = vmatprep.subr.mxu1 %v3646_v22 }
 0x235   : > { %2421 = vmatpush3.msra.mxu1 %v3649_v57  ;;  %v1731_v57 = vlaneseq }
 0x236   : > { %2422 = vmatprep.subr.mxu1 %v3646_v22 }
 0x237   : > { %2423 = vmatpush3.msra.mxu1 %v3650_v44 }
 0x238   : > { %2424 = vmatprep.subr.mxu1 %v3646_v22 }
 0x239   : > { %2425 = vmatpush3.msra.mxu1 %v3651_v13  ;;  %v1727_v13 = vld [vmem:[%s3610_s4] sm:$0x1] }
 0x23a   : > { %2426 = vmatprep.subr.mxu1 %v3646_v22 }
 0x23b   : > { %2427 = vmatpush3.msra.mxu1 %v3652_v26 }
 0x23c   : > { %2428 = vmatprep.subr.mxu1 %v3646_v22 }
 0x23d   : > { %2429 = vmatpush3.msra.mxu1 %v3653_v36 }
 0x23e   : > { %2430 = vmatprep.subr.mxu1 %v3646_v22 }
 0x23f   : > { %2431 = vmatpush3.msra.mxu1 %v3654_v30 }
 0x240   : > { %2432 = vmatprep.subr.mxu1 %v3646_v22 }
 0x241   : > { %2433 = vmatpush3.msra.mxu1 %v3655_v11 }
 0x242   : > { %2434 = vmatprep.subr.mxu1 %v3646_v22 }
 0x243   : > { %2435 = vmatpush3.msra.mxu1 %v3656_v56 }
 0x244   : > { %2436 = vmatprep.subr.mxu1 %v3646_v22 }
 0x245   : > { %2437 = vmatpush3.msra.mxu1 %v3657_v38 }
 0x246   : > { %2438 = vmatprep.subr.mxu1 %v3646_v22 }
 0x247   : > { %2439 = vmatpush3.msra.mxu1 %v3658_v29 }
 0x248   : > { %2440 = vmatprep.subr.mxu1 %v3646_v22 }
 0x249   : > { %2441 = vmatpush3.msra.mxu1 %v3659_v5 }
 0x24a   : > { %2442 = vmatprep.subr.mxu1 %v3646_v22 }
 0x24b   : > { %2443 = vmatpush3.msra.mxu1 %v3660_v58 }
 0x24c   : > { %2445 = vmatmul.mubr.f32.vlgmr.msra.gmra.mxu1 %v1411_v9  ;;  %2447 = vmatprep.subr.mxu1 %v3646_v22 }
 0x24d   : > { %2448 = vmatpush3.msra.mxu1 %v3302_v10  ;;  %2455 = vmatprep.mubr.msk.f32.mxu1 %vm2571_vm2, %v3646_v22 }
 0x24e   : > { %2449 = vmatprep.subr.mxu1 %v3646_v22 }
 0x24f   : > { %2450 = vmatpush3.msra.mxu1 %v3307_v49 }
 0x250   : > { %2451 = vmatprep.subr.mxu1 %v3646_v22 }
 0x251   : > { %2452 = vmatpush3.msra.mxu1 %v3316_v20  ;;  %v1732_v20 = vshrl.u32 %v1731_v57, 7 }
 0x252   : > { %2453 = vmatprep.subr.mxu1 %v3646_v22  ;;  %v1723_v22 = vld [vmem:[%s3609_s3] sm:$0x1] }
 0x253   : > { %2454 = vmatpush3.msra.mxu1 %v3323_v4  ;;  %v1733_v4 = vsub.s32 0, %v1732_v20 }
 0x2ec   : > { %v1572_v62 = vpop.f32.mrf.mxu1 }
 0x2ed   : > { %v1576_v41 = vmul.f32 0.0009765625, %v1572_v62 }
 0x2ee   : > { %v2411_v43 = vpop.f32.mrf.mxu1 }
 0x2ef   : > { %v1721_v0 = vmul.f32 %v1576_v41, %v1576_v41 }
 0x30c   : > { %v1643_v34 = vpop.f32.mrf.mxu1 }
 0x30d   : > { %2456 = vmatmul.mubr.msk.f32.vlgmr.msra.gmra.mxu1 %vm1502_vm3, %v1643_v34 }
 0x30e   : > { %v2446_v10 = vpop.f32.mrf.mxu1 }
 0x3cd   : > { %v1716_v7 = vpop.f32.mrf.mxu1 }
 0x3ce   : > { %v1720_v18 = vmul.f32 0.0009765625, %v1716_v7 }
 0x3cf   : > { %v2457_v48 = vpop.f32.mrf.mxu1 }
 0x3d0   : > { %v1722_v49 = vsub.f32 %v1720_v18, %v1721_v0 }
 0x3d2   : > { %v1724_v42 = vadd.f32 1e-05, %v1722_v49 }
 0x3d4   : > { %2506 = vrsqrt.f32 %v1724_v42 }
 0x3e1   : > { %v2507_v55 = vpop.eup %2506 }
 0x3e2   : > { %v1726_v44 = vmul.f32 %v2507_v55, %v1723_v22 }
 0x3e4   : > { %v1728_v45 = vmul.f32 %v1726_v44, %v1576_v41  ;;  %v1734_v26 = vrot.slane %v1726_v44, %v1733_v4 }
 0x3e6   : > { %v1729_v36 = vsub.f32 %v1727_v13, %v1728_v45  ;;  %v1736_v35 = vmul.f32 %v1734_v26, %v3120_v54  ;;  %v1737_v30 = vmul.f32 %v1734_v26, %v3123_v53  ;;  %v1738_v11 = vmul.f32 %v1734_v26, %v3132_v60 }
 0x3e7   : > { %v1739_v31 = vmul.f32 %v1734_v26, %v3135_v51  ;;  %v1740_v56 = vmul.f32 %v1734_v26, %v3140_v63  ;;  %v1741_v38 = vmul.f32 %v1734_v26, %v3148_v61  ;;  %v1742_v23 = vmul.f32 %v1734_v26, %v3154_v15 }
 0x3e8   : > { %v1772_v29 = vrot.slane %v1729_v36, %v1733_v4  ;;  %v1743_v5 = vmul.f32 %v1734_v26, %v3162_v47  ;;  %v1744_v9 = vmul.f32 %v1734_v26, %v3168_v21  ;;  %v1745_v58 = vmul.f32 %v1734_v26, %v3176_v1 }
 0x3e9   : > { %v1746_v54 = vmul.f32 %v1734_v26, %v3182_v27  ;;  %v1747_v53 = vmul.f32 %v1734_v26, %v3188_v52  ;;  %v1748_v60 = vmul.f32 %v1734_v26, %v3194_v33  ;;  %v1749_v51 = vmul.f32 %v1734_v26, %v3200_v3 }
 0x3ea   : > { %v1750_v63 = vmul.f32 %v1734_v26, %v3206_v39  ;;  %v1751_v61 = vmul.f32 %v1734_v26, %v3212_v14  ;;  %v1752_v15 = vmul.f32 %v1734_v26, %v3218_v25  ;;  %v1753_v47 = vmul.f32 %v1734_v26, %v3224_v19 }
 0x3eb   : > { %v1754_v21 = vmul.f32 %v1734_v26, %v3230_v28  ;;  %v1755_v1 = vmul.f32 %v1734_v26, %v3236_v46  ;;  %v1756_v27 = vmul.f32 %v1734_v26, %v3241_v12  ;;  %v1757_v52 = vmul.f32 %v1734_v26, %v3247_v6 }
 0x3ec   : > { %v1758_v33 = vmul.f32 %v1734_v26, %v3252_v24  ;;  %v1759_v3 = vmul.f32 %v1734_v26, %v3257_v17  ;;  %v1760_v39 = vmul.f32 %v1734_v26, %v3262_v37  ;;  %v1761_v14 = vmul.f32 %v1734_v26, %v3267_v59 }
 0x3ed   : > { %v1762_v25 = vmul.f32 %v1734_v26, %v3272_v40  ;;  %v1763_v19 = vmul.f32 %v1734_v26, %v3277_v16  ;;  %v1764_v28 = vmul.f32 %v1734_v26, %v3282_v8  ;;  %v1765_v46 = vmul.f32 %v1734_v26, %v3287_v32 }
 0x3ee   : > { %v1766_v12 = vmul.f32 %v1734_v26, %v3291_v50  ;;  %v1767_v6 = vmul.f32 %v1734_v26, %v3295_v2  ;;  %v1774_v24 = vadd.f32 %v1772_v29, %v1736_v35  ;;  %v1775_v62 = vadd.f32 %v1772_v29, %v1737_v30 }
 0x3ef   : > { %v1776_v17 = vadd.f32 %v1772_v29, %v1738_v11  ;;  %v1777_v37 = vadd.f32 %v1772_v29, %v1739_v31  ;;  %v1778_v43 = vadd.f32 %v1772_v29, %v1740_v56  ;;  %v1779_v59 = vadd.f32 %v1772_v29, %v1741_v38 }
 0x3f0   : > { %v1780_v34 = vadd.f32 %v1772_v29, %v1742_v23  ;;  %v1781_v40 = vadd.f32 %v1772_v29, %v1743_v5  ;;  %v1782_v10 = vadd.f32 %v1772_v29, %v1744_v9  ;;  %v1783_v16 = vadd.f32 %v1772_v29, %v1745_v58 }
 0x3f1   : > { %v1784_v41 = vadd.f32 %v1772_v29, %v1746_v54  ;;  %v1785_v8 = vadd.f32 %v1772_v29, %v1747_v53  ;;  %v1786_v7 = vadd.f32 %v1772_v29, %v1748_v60  ;;  %v1787_v32 = vadd.f32 %v1772_v29, %v1749_v51 }
 0x3f2   : > { %v1788_v50 = vadd.f32 %v1772_v29, %v1750_v63  ;;  %v1789_v2 = vadd.f32 %v1772_v29, %v1751_v61  ;;  %v1790_v0 = vadd.f32 %v1772_v29, %v1752_v15  ;;  %v1791_v18 = vadd.f32 %v1772_v29, %v1753_v47 }
 0x3f3   : > { %v3479_v48 = vadd.f32 %v1772_v29, %v1754_v21  ;;  %v3481_v49 = vadd.f32 %v1772_v29, %v1755_v1  ;;  %v3483_v42 = vadd.f32 %v1772_v29, %v1756_v27  ;;  %v3485_v57 = vadd.f32 %v1772_v29, %v1757_v52 }
 0x3f4   : > { %v3487_v20 = vadd.f32 %v1772_v29, %v1758_v33  ;;  %v3489_v22 = vadd.f32 %v1772_v29, %v1759_v3  ;;  %v3491_v4 = vadd.f32 %v1772_v29, %v1760_v39  ;;  %v3493_v55 = vadd.f32 %v1772_v29, %v1761_v14 }
 0x3f5   : > { %v3495_v44 = vadd.f32 %v1772_v29, %v1762_v25  ;;  %v3497_v13 = vadd.f32 %v1772_v29, %v1763_v19  ;;  %v3499_v45 = vadd.f32 %v1772_v29, %v1764_v28  ;;  %v3501_v26 = vadd.f32 %v1772_v29, %v1765_v46 }
 0x3f6   : > { %v3503_v36 = vadd.f32 %v1772_v29, %v1766_v12  ;;  %v3505_v35 = vadd.f32 %v1772_v29, %v1767_v6  ;;  %v1806_v30 = vmax.f32 %v1774_v24, 0.0  ;;  %v1807_v11 = vmax.f32 %v1775_v62, 0.0 }
 0x3f7   : > { %v1808_v31 = vmax.f32 %v1776_v17, 0.0  ;;  %v1809_v56 = vmax.f32 %v1777_v37, 0.0  ;;  %v1810_v38 = vmax.f32 %v1778_v43, 0.0  ;;  %v1811_v23 = vmax.f32 %v1779_v59, 0.0 }
 0x3f8   : > { %v1812_v5 = vmax.f32 %v1780_v34, 0.0  ;;  %v1813_v9 = vmax.f32 %v1781_v40, 0.0  ;;  %v1814_v58 = vmax.f32 %v1782_v10, 0.0  ;;  %v1815_v54 = vmax.f32 %v1783_v16, 0.0  ;;  %1838 = vst [vmem:[%s3507_s22] sm:$0xff] %v1806_v30  ;;  %1839 = vst [vmem:[%s3507_s22 + $0x8] sm:$0xff] %v1807_v11 }
 0x3f9   : > { %v1816_v29 = vmax.f32 %v1784_v41, 0.0  ;;  %v1817_v53 = vmax.f32 %v1785_v8, 0.0  ;;  %v1818_v60 = vmax.f32 %v1786_v7, 0.0  ;;  %v1819_v51 = vmax.f32 %v1787_v32, 0.0  ;;  %1840 = vst [vmem:[%s3507_s22 + $0x10] sm:$0xff] %v1808_v31  ;;  %1841 = vst [vmem:[%s3507_s22 + $0x18] sm:$0xff] %v1809_v56 }
 0x3fa   : > { %1842 = vst [vmem:[%s3507_s22 + $0x20] sm:$0xff] %v1810_v38  ;;  %1843 = vst [vmem:[%s3507_s22 + $0x28] sm:$0xff] %v1811_v23  ;;  %v1820_v63 = vmax.f32 %v1788_v50, 0.0  ;;  %v1821_v61 = vmax.f32 %v1789_v2, 0.0  ;;  %v1822_v15 = vmax.f32 %v1790_v0, 0.0  ;;  %v1823_v47 = vmax.f32 %v1791_v18, 0.0 }
 0x3fb   : > { %1844 = vst [vmem:[%s3507_s22 + $0x30] sm:$0xff] %v1812_v5  ;;  %1845 = vst [vmem:[%s3507_s22 + $0x38] sm:$0xff] %v1813_v9  ;;  %v1824_v21 = vmax.f32 %v3479_v48, 0.0  ;;  %v1825_v1 = vmax.f32 %v3481_v49, 0.0  ;;  %v1826_v27 = vmax.f32 %v3483_v42, 0.0  ;;  %v1827_v52 = vmax.f32 %v3485_v57, 0.0 }
 0x3fc   : > { %1846 = vst [vmem:[%s3507_s22 + $0x40] sm:$0xff] %v1814_v58  ;;  %1847 = vst [vmem:[%s3507_s22 + $0x48] sm:$0xff] %v1815_v54  ;;  %v1828_v33 = vmax.f32 %v3487_v20, 0.0  ;;  %v1829_v3 = vmax.f32 %v3489_v22, 0.0  ;;  %v1830_v39 = vmax.f32 %v3491_v4, 0.0  ;;  %v1831_v14 = vmax.f32 %v3493_v55, 0.0 }
 0x3fd   : > { %1848 = vst [vmem:[%s3507_s22 + $0x50] sm:$0xff] %v1816_v29  ;;  %1849 = vst [vmem:[%s3507_s22 + $0x58] sm:$0xff] %v1817_v53  ;;  %v1832_v25 = vmax.f32 %v3495_v44, 0.0  ;;  %v1833_v19 = vmax.f32 %v3497_v13, 0.0  ;;  %v1834_v28 = vmax.f32 %v3499_v45, 0.0  ;;  %v1835_v46 = vmax.f32 %v3501_v26, 0.0 }
 0x3fe   : > { %1850 = vst [vmem:[%s3507_s22 + $0x60] sm:$0xff] %v1818_v60  ;;  %1851 = vst [vmem:[%s3507_s22 + $0x68] sm:$0xff] %v1819_v51  ;;  %v1836_v12 = vmax.f32 %v3503_v36, 0.0  ;;  %v1837_v6 = vmax.f32 %v3505_v35, 0.0 }
 0x3ff   : > { %1852 = vst [vmem:[%s3507_s22 + $0x70] sm:$0xff] %v1820_v63  ;;  %1853 = vst [vmem:[%s3507_s22 + $0x78] sm:$0xff] %v1821_v61 }
 0x400   : > { %1854 = vst [vmem:[%s3507_s22 + $0x80] sm:$0xff] %v1822_v15  ;;  %1855 = vst [vmem:[%s3507_s22 + $0x88] sm:$0xff] %v1823_v47 }
 0x401   : > { %1856 = vst [vmem:[%s3507_s22 + $0x90] sm:$0xff] %v1824_v21  ;;  %1857 = vst [vmem:[%s3507_s22 + $0x98] sm:$0xff] %v1825_v1 }
 0x402   : > { %1858 = vst [vmem:[%s3507_s22 + $0xa0] sm:$0xff] %v1826_v27  ;;  %1859 = vst [vmem:[%s3507_s22 + $0xa8] sm:$0xff] %v1827_v52 }
 0x403   : > { %1860 = vst [vmem:[%s3507_s22 + $0xb0] sm:$0xff] %v1828_v33  ;;  %1861 = vst [vmem:[%s3507_s22 + $0xb8] sm:$0xff] %v1829_v3 }
 0x404   : > { %1862 = vst [vmem:[%s3507_s22 + $0xc0] sm:$0xff] %v1830_v39  ;;  %1863 = vst [vmem:[%s3507_s22 + $0xc8] sm:$0xff] %v1831_v14 }
 0x405   : > { %1864 = vst [vmem:[%s3507_s22 + $0xd0] sm:$0xff] %v1832_v25  ;;  %1865 = vst [vmem:[%s3507_s22 + $0xd8] sm:$0xff] %v1833_v19 }
 0x406   : > { %1866 = vst [vmem:[%s3507_s22 + $0xe0] sm:$0xff] %v1834_v28  ;;  %1867 = vst [vmem:[%s3507_s22 + $0xe8] sm:$0xff] %v1835_v46 }
 0x407   : > { %1868 = vst [vmem:[%s3507_s22 + $0xf0] sm:$0xff] %v1836_v12  ;;  %1869 = vst [vmem:[%s3507_s22 + $0xf8] sm:$0xff] %v1837_v6 }
 0x408   : > { %2521 = shalt.err (!%p2518_p3)
}
 0x409   : > { %s2522_s18 = scalar_lea.hbm %s3548_s9, 4096  ;;  %s2526_s21 = scalar_lea.hbm %s3613_s7, 8192 }
 0x40a   : > { %p2523_p4 = scmp.ne.s32.totalorder %s3548_s9, %s2522_s18  ;;  %p2527_p9 = scmp.lt.s32.totalorder %s3548_s9, %s3613_s7 }
 0x40b   : > { %p2528_p10 = scmp.lt.s32.totalorder %s2526_s21, %s2522_s18 }
 0x40c   : > { %p2524_p7 = pnand %p2523_p4, %p2653_p5 }
 0x40d   : > { %p2529_p11 = por %p2528_p10, %p2527_p9 }
 0x40e   : > { %p2525_p8 = pneg %p2524_p7 }
 0x410   : > { %p2530_p12 = pnand %p2529_p11, %p2525_p8 }
 0x412   : > { %2533 = shalt.err (!%p2530_p12)
}
 0x413   : > { %s2573_s28 = smov 128   ;;  %s2574_s8 = smov 8  }
 0x414   : > { %2463 = dma.vmem_to_hbm [thread:$0]  (%p2653_p5), %s3550_s29, 4096, %s3548_s9, %s3566_s13, %s2573_s28, %s2573_s28, %s2574_s8  }
 0x415 PF: > { %p2469_p13 = scmp.ge.s32.totalorder %s2568_s27, 2  ;;  %s1899_s14 = sand.u32 1, %s2556_s24  }
 0x416   : > { %s1900_s15 = scalar_lea.sflag [#allocation3], %s1899_s14 }
 0x417   : > { %p2466_p0 = pnand %p2469_p13, %p2657_p6 }
 0x419   : > { %p2467_p1 = pneg %p2466_p0 }
 0x41b   : > { %2551 = dma.done.wait (%p2467_p1), %s1900_s15, 4096  }
 0x41c   : > { %2553 = vsyncadd (%p2467_p1), %s1900_s15, 4294963200  ;;  %p17_p2 = scmp.ge.s32.totalorder %s2640_s30, 4   ;;  %s3661_s24 = smov %s2560_s25 }
 0x41d   : > { %s3662_s25 = smov %s2564_s26  ;;  %s3663_s26 = smov %s2651_s10 }
 0x41e   : > { %s3664_s27 = smov %s2640_s30  ;;  %19 = sbr.rel (!%p17_p2) target bundleno = 3 (0x3), region = 85 }
 0x423   :  { %1905 = vsyncpa [#allocation3], 1 }
 0x424   :  { %1907 = vsyncpa [#allocation3 + $0x1], 1 }

</bundles_post_ra>
